<compile_context>
chip_gen: v6e
topology: v6e:2x2x1
jax: 0.10.0
libtpu: 0.0.40
codegen_flags: <defaults>
</compile_context>

<pallas_src>
import functools

import jax
import jax.numpy as jnp
import numpy as np
from jax.experimental import pallas as pl
from jax.experimental.pallas import tpu as pltpu


def _leaky(x):
    # nn.LeakyReLU default negative_slope = 0.01
    return jnp.where(x >= 0, x, 0.01 * x)


def _offsets(D, H):
    """Row offsets inside the packed (rows, H) weight slab."""
    o_wih = 0                 # 4 gates x D rows
    o_whh = 4 * D             # 4 gates x H rows
    o_b = 4 * D + 4 * H       # 8 rows reserved (first 4 = per-gate LSTM bias)
    o_fc1 = o_b + 8           # H rows (fc1 weight)
    o_misc = o_fc1 + H        # +0 b_fc1, +1 w_head^T, +2 w_tail^T, +3 w_fc2^T
    total = o_misc + 4
    padded = ((total + 7) // 8) * 8
    return o_wih, o_whh, o_b, o_fc1, o_misc, padded


# -----------------------------------------------------------------------------
# Fused kernel: LSTM (final hidden state) + relation strength + softmax(dim=0)
#               + propagation + fc1/fc2
# -----------------------------------------------------------------------------
def trs_kernel(scal_s, x_ref, w_ref, rel_ref, mask_ref, out_ref, *, relation_type):
    T, N, D = x_ref.shape
    H = w_ref.shape[1]
    R = rel_ref.shape[0]
    o_wih, o_whh, o_b, o_fc1, o_misc, _ = _offsets(D, H)

    W = w_ref[...]                       # single packed weight slab (rows, H)

    # ---- Phase 1: hoisted per-gate input projections (off the serial chain).
    x2d = x_ref[...].reshape(T * N, D)
    xw = []
    for g in range(4):
        wih_g = W[o_wih + g * D:o_wih + (g + 1) * D, :]           # (D, H)
        b_g = W[o_b + g:o_b + g + 1, :]                           # (1, H)
        xw_g = jnp.dot(x2d, wih_g, preferred_element_type=jnp.float32) + b_g
        xw.append(xw_g.reshape(T, N, H))                          # kept as values
    whh = [W[o_whh + g * H:o_whh + (g + 1) * H, :] for g in range(4)]  # (H, H)

    # ---- Phase 2: LSTM recurrence (torch gate order i, f, g, o).
    # Fully unrolled over static T; each gate is its own (N, H) tile so no
    # sub-vreg lane extraction sits on the serial h -> h dependence chain.
    h = jnp.zeros((N, H), jnp.float32)
    c = jnp.zeros((N, H), jnp.float32)
    for t in range(T):
        gi = xw[0][t] + jnp.dot(h, whh[0], preferred_element_type=jnp.float32)
        gf = xw[1][t] + jnp.dot(h, whh[1], preferred_element_type=jnp.float32)
        gg = xw[2][t] + jnp.dot(h, whh[2], preferred_element_type=jnp.float32)
        go = xw[3][t] + jnp.dot(h, whh[3], preferred_element_type=jnp.float32)
        i_g = jax.nn.sigmoid(gi)
        f_g = jax.nn.sigmoid(gf)
        g_g = jnp.tanh(gg)
        o_g = jax.nn.sigmoid(go)
        c = f_g * c + i_g * g_g
        h = o_g * jnp.tanh(c)
    emb = h                                                       # (N, H)

    # ---- Phase 3: relation importance from lane-dense (R, N, N);
    # unrolled sum of (scalar-from-SMEM) * (N, N) VPU FMAs (no cross-lane reduce).
    acc = jnp.zeros((N, N), jnp.float32)
    for r in range(R):
        acc = acc + rel_ref[r] * scal_s[r]
    ri = _leaky(acc + scal_s[R])                                  # + b_exp

    if relation_type == "explicit":
        sim = jax.lax.dot_general(emb, emb, (((1,), (1,)), ((), ())),
                                  preferred_element_type=jnp.float32)   # (N, N)
        rel_strength = sim * ri
    else:  # implicit
        w_head_row = W[o_misc + 1:o_misc + 2, :]                  # (1, H)
        w_tail_row = W[o_misc + 2:o_misc + 3, :]                  # (1, H)
        hw = _leaky(jax.lax.dot_general(emb, w_head_row, (((1,), (1,)), ((), ())),
                                        preferred_element_type=jnp.float32)
                    + scal_s[R + 1])                              # (N, 1)
        tw = _leaky(jax.lax.dot_general(w_tail_row, emb, (((1,), (1,)), ((), ())),
                                        preferred_element_type=jnp.float32)
                    + scal_s[R + 2])                              # (1, N)
        rel_strength = hw + tw + ri                               # broadcasts

    # masked softmax over dim 0 (nn.Softmax(dim=0)); divide -> reciprocal + mul
    z = mask_ref[...] + rel_strength
    z = z - jnp.max(z, axis=0, keepdims=True)
    e = jnp.exp(z)
    inv = pl.reciprocal(jnp.sum(e, axis=0, keepdims=True), approx=False)  # (1, N)
    sm = e * inv

    prop = jnp.dot(sm, emb, preferred_element_type=jnp.float32)          # (N, H)
    w_fc1 = W[o_fc1:o_fc1 + H, :]
    b_fc1 = W[o_misc:o_misc + 1, :]                                      # (1, H)
    h1 = _leaky(jnp.dot(prop, w_fc1, preferred_element_type=jnp.float32) + b_fc1)
    w_fc2_row = W[o_misc + 3:o_misc + 4, :]                              # (1, H)
    # Lane-dense (1, N) output row (full-width vst); wrapper restores (N, 1).
    out_ref[...] = (jax.lax.dot_general(w_fc2_row, h1, (((1,), (1,)), ((), ())),
                                        preferred_element_type=jnp.float32)
                    + scal_s[R + 3])


# -----------------------------------------------------------------------------
# Wrapper: pack weights into one lane-dense slab + one SMEM scalar vector.
# -----------------------------------------------------------------------------
def pack_weights(params, D, H):
    _, _, _, _, _, padded = _offsets(D, H)
    w_ih = params["w_ih"].reshape(D, 4, H).transpose(1, 0, 2).reshape(4 * D, H)
    w_hh = params["w_hh"].reshape(H, 4, H).transpose(1, 0, 2).reshape(4 * H, H)
    b_blk = jnp.zeros((8, H), jnp.float32).at[:4].set(params["b_lstm"].reshape(4, H))
    rows = [w_ih, w_hh, b_blk,
            params["w_fc1"],
            params["b_fc1"].reshape(1, H),
            params["w_head"].reshape(1, H),
            params["w_tail"].reshape(1, H),
            params["w_fc2"].reshape(1, H)]
    packed = jnp.concatenate(rows, axis=0).astype(jnp.float32)
    if padded > packed.shape[0]:
        packed = jnp.concatenate(
            [packed, jnp.zeros((padded - packed.shape[0], H), jnp.float32)], axis=0)
    return packed


def pack_scalars(params, R):
    return jnp.concatenate([params["w_exp3"].reshape(R),
                            params["b_exp"].reshape(1),
                            params["b_head"].reshape(1),
                            params["b_tail"].reshape(1),
                            params["b_fc2"].reshape(1)]).astype(jnp.float32)


def trs_forward(stock_hist, params, relation_rnn, rel_mask, relation_type):
    """stock_hist: (T, N, D) time-major; relation_rnn: (R, N, N) lane-dense."""
    T, N, D = stock_hist.shape
    H = params["w_hh"].shape[0]
    R = relation_rnn.shape[0]

    packed = pack_weights(params, D, H)
    scal = pack_scalars(params, R)

    smem = pl.BlockSpec(memory_space=pltpu.MemorySpace.SMEM)
    vmem = pl.BlockSpec(memory_space=pltpu.MemorySpace.VMEM)

    # Resident bytes (inputs + xw temporaries + output), x2 + headroom for
    # (8,128) tile padding / compiler temporaries; capped by physical VMEM.
    raw = 4 * (int(stock_hist.size) + int(packed.size) + int(relation_rnn.size)
               + int(rel_mask.size) + T * N * 4 * H + N)
    try:
        phys = int(pltpu.get_tpu_info().vmem_capacity_bytes)  # 128 MiB v5e/v6e, 64 MiB v7x
    except Exception:
        phys = 64 << 20                                       # conservative fallback
    cap = min(int(0.78 * phys), 100 << 20)
    vmem_limit = int(min(max(2 * raw + (8 << 20), 16 << 20), cap))

    kern = functools.partial(trs_kernel, relation_type=relation_type)
    out_row = pl.pallas_call(
        kern,
        out_shape=jax.ShapeDtypeStruct((1, N), jnp.float32),
        in_specs=[smem, vmem, vmem, vmem, vmem],
        out_specs=vmem,
        compiler_params=pltpu.CompilerParams(vmem_limit_bytes=vmem_limit),
    )(scal, stock_hist, packed, relation_rnn, rel_mask)
    return out_row.reshape(N, 1)


# -----------------------------------------------------------------------------
# Pure-JAX reference (for correctness check) -- original (N, N, R) relation
# layout, torch-style math.
# -----------------------------------------------------------------------------
def trs_reference(x, params, relation, rel_mask, relation_type):
    N = x.shape[1]
    H = params["w_hh"].shape[0]

    def step(carry, xt):
        h, c = carry
        gates = xt @ params["w_ih"] + h @ params["w_hh"] + params["b_lstm"]
        i, f, g, o = jnp.split(gates, 4, axis=1)
        i, f, o = jax.nn.sigmoid(i), jax.nn.sigmoid(f), jax.nn.sigmoid(o)
        g = jnp.tanh(g)
        c = f * c + i * g
        h = o * jnp.tanh(c)
        return (h, c), None

    (emb, _), _ = jax.lax.scan(
        step, (jnp.zeros((N, H), jnp.float32), jnp.zeros((N, H), jnp.float32)), x)

    ri = _leaky(jnp.sum(relation * params["w_exp3"], axis=-1) + params["b_exp"])
    if relation_type == "explicit":
        rs = (emb @ emb.T) * ri
    else:
        hw = _leaky(emb @ params["w_head"] + params["b_head"])
        tw = _leaky(emb @ params["w_tail"] + params["b_tail"])
        rs = hw + tw.T + ri
    z = rel_mask + rs
    sm = jax.nn.softmax(z, axis=0)
    prop = sm @ emb
    h1 = _leaky(prop @ params["w_fc1"] + params["b_fc1"])
    return h1 @ params["w_fc2"] + params["b_fc2"]


# -----------------------------------------------------------------------------
# Deterministic parameter init (synthetic; Linear biases zero like weight_init)
# -----------------------------------------------------------------------------
def init_params(key, D, H, R):
    ks = jax.random.split(key, 8)
    s = 0.1
    w_exp = s * jax.random.normal(ks[4], (R, 1), jnp.float32)
    return {
        # LSTM weights stored transposed vs torch: (in, 4H), (H, 4H); bias = b_ih + b_hh.
        "w_ih": s * jax.random.normal(ks[0], (D, 4 * H), jnp.float32),
        "w_hh": s * jax.random.normal(ks[1], (H, 4 * H), jnp.float32),
        "b_lstm": s * jax.random.normal(ks[2], (1, 4 * H), jnp.float32),
        "w_exp3": w_exp.reshape(1, 1, R),
        "b_exp": jnp.zeros((1, 1), jnp.float32),
        "w_head": s * jax.random.normal(ks[5], (H, 1), jnp.float32),
        "b_head": jnp.zeros((1, 1), jnp.float32),
        "w_tail": s * jax.random.normal(ks[6], (H, 1), jnp.float32),
        "b_tail": jnp.zeros((1, 1), jnp.float32),
        "w_fc1": s * jax.random.normal(ks[7], (H, H), jnp.float32),
        "b_fc1": jnp.zeros((1, H), jnp.float32),
        "w_fc2": s * jax.random.normal(ks[3], (H, 1), jnp.float32),
        "b_fc2": jnp.zeros((1, 1), jnp.float32),
    }


if __name__ == "__main__":
    T, N, D, H, R = 8, 8, 16, 32, 4   # seq, n_stocks, lstm_input_dims, hidden, rel types

    key = jax.random.PRNGKey(0)
    k_x, k_rel, k_adj, k_p = jax.random.split(key, 4)

    stock_hist = jax.random.normal(k_x, (T, N, D), jnp.float32)
    relation = jax.random.uniform(k_rel, (N, N, R), jnp.float32)
    adj = (jax.random.uniform(k_adj, (N, N)) > 0.3).astype(jnp.float32)
    adj = adj.at[jnp.arange(N), jnp.arange(N)].set(1.0)
    rel_mask = (1.0 - adj) * (-1e9)

    # One-time re-layout of the constant relation tensor to lane-dense (R, N, N)
    # (the module registers `relation` once at __init__; do the transpose there).
    relation_rnn = jnp.transpose(relation, (2, 0, 1))

    params = init_params(k_p, D, H, R)

    for rtype in ("explicit", "implicit"):
        preds = trs_forward(stock_hist, params, relation_rnn, rel_mask, rtype)
        preds = jax.block_until_ready(preds)
        ref = trs_reference(stock_hist, params, relation, rel_mask, rtype)
        np.testing.assert_allclose(np.asarray(preds), np.asarray(ref),
                                   rtol=1e-3, atol=1e-3)
        assert preds.shape == (N, 1)

    print("KERNEL_OK")
</pallas_src>

<mosaic_0001>
module attributes {stable_mosaic.version = 11 : i64} {
  func.func @trs_kernel(%arg0: memref<8xf32, #tpu.memory_space<smem>>, %arg1: memref<8x8x16xf32, #tpu.memory_space<vmem>>, %arg2: memref<240x32xf32, #tpu.memory_space<vmem>>, %arg3: memref<4x8x8xf32, #tpu.memory_space<vmem>>, %arg4: memref<8x8xf32, #tpu.memory_space<vmem>>, %arg5: memref<1x8xf32, #tpu.memory_space<vmem>>) attributes {dimension_semantics = [], scalar_prefetch = 0 : i64, scratch_operands = 0 : i64, tpu.core_type = #tpu.core_type<tc>} {
    %c0 = arith.constant 0 : index
    %c0_0 = arith.constant 0 : index
    %0 = vector.load %arg2[%c0, %c0_0] : memref<240x32xf32, #tpu.memory_space<vmem>>, vector<240x32xf32>
    %c0_1 = arith.constant 0 : index
    %c0_2 = arith.constant 0 : index
    %c0_3 = arith.constant 0 : index
    %1 = vector.load %arg1[%c0_1, %c0_2, %c0_3] : memref<8x8x16xf32, #tpu.memory_space<vmem>>, vector<8x8x16xf32>
    %2 = vector.shape_cast %1 : vector<8x8x16xf32> to vector<64x16xf32>
    %3 = vector.extract_strided_slice %0 {offsets = [0, 0], sizes = [16, 32], strides = [1, 1]} : vector<240x32xf32> to vector<16x32xf32>
    %4 = vector.extract_strided_slice %0 {offsets = [192, 0], sizes = [1, 32], strides = [1, 1]} : vector<240x32xf32> to vector<1x32xf32>
    %cst = arith.constant dense<0.000000e+00> : vector<64x32xf32>
    %5 = tpu.matmul %2, %3, %cst {dimension_numbers = #tpu.dot_dimension_numbers<[1], [0], [0], [1], [0, 0, 1, 1], [], []>} : vector<64x16xf32>, vector<16x32xf32>, vector<64x32xf32> -> vector<64x32xf32>
    %6 = vector.broadcast %4 : vector<1x32xf32> to vector<64x32xf32>
    %7 = arith.addf %5, %6 : vector<64x32xf32>
    %8 = vector.shape_cast %7 : vector<64x32xf32> to vector<8x8x32xf32>
    %9 = vector.extract_strided_slice %0 {offsets = [16, 0], sizes = [16, 32], strides = [1, 1]} : vector<240x32xf32> to vector<16x32xf32>
    %10 = vector.extract_strided_slice %0 {offsets = [193, 0], sizes = [1, 32], strides = [1, 1]} : vector<240x32xf32> to vector<1x32xf32>
    %cst_4 = arith.constant dense<0.000000e+00> : vector<64x32xf32>
    %11 = tpu.matmul %2, %9, %cst_4 {dimension_numbers = #tpu.dot_dimension_numbers<[1], [0], [0], [1], [0, 0, 1, 1], [], []>} : vector<64x16xf32>, vector<16x32xf32>, vector<64x32xf32> -> vector<64x32xf32>
    %12 = vector.broadcast %10 : vector<1x32xf32> to vector<64x32xf32>
    %13 = arith.addf %11, %12 : vector<64x32xf32>
    %14 = vector.shape_cast %13 : vector<64x32xf32> to vector<8x8x32xf32>
    %15 = vector.extract_strided_slice %0 {offsets = [32, 0], sizes = [16, 32], strides = [1, 1]} : vector<240x32xf32> to vector<16x32xf32>
    %16 = vector.extract_strided_slice %0 {offsets = [194, 0], sizes = [1, 32], strides = [1, 1]} : vector<240x32xf32> to vector<1x32xf32>
    %cst_5 = arith.constant dense<0.000000e+00> : vector<64x32xf32>
    %17 = tpu.matmul %2, %15, %cst_5 {dimension_numbers = #tpu.dot_dimension_numbers<[1], [0], [0], [1], [0, 0, 1, 1], [], []>} : vector<64x16xf32>, vector<16x32xf32>, vector<64x32xf32> -> vector<64x32xf32>
    %18 = vector.broadcast %16 : vector<1x32xf32> to vector<64x32xf32>
    %19 = arith.addf %17, %18 : vector<64x32xf32>
    %20 = vector.shape_cast %19 : vector<64x32xf32> to vector<8x8x32xf32>
    %21 = vector.extract_strided_slice %0 {offsets = [48, 0], sizes = [16, 32], strides = [1, 1]} : vector<240x32xf32> to vector<16x32xf32>
    %22 = vector.extract_strided_slice %0 {offsets = [195, 0], sizes = [1, 32], strides = [1, 1]} : vector<240x32xf32> to vector<1x32xf32>
    %cst_6 = arith.constant dense<0.000000e+00> : vector<64x32xf32>
    %23 = tpu.matmul %2, %21, %cst_6 {dimension_numbers = #tpu.dot_dimension_numbers<[1], [0], [0], [1], [0, 0, 1, 1], [], []>} : vector<64x16xf32>, vector<16x32xf32>, vector<64x32xf32> -> vector<64x32xf32>
    %24 = vector.broadcast %22 : vector<1x32xf32> to vector<64x32xf32>
    %25 = arith.addf %23, %24 : vector<64x32xf32>
    %26 = vector.shape_cast %25 : vector<64x32xf32> to vector<8x8x32xf32>
    %27 = vector.extract_strided_slice %0 {offsets = [64, 0], sizes = [32, 32], strides = [1, 1]} : vector<240x32xf32> to vector<32x32xf32>
    %28 = vector.extract_strided_slice %0 {offsets = [96, 0], sizes = [32, 32], strides = [1, 1]} : vector<240x32xf32> to vector<32x32xf32>
    %29 = vector.extract_strided_slice %0 {offsets = [128, 0], sizes = [32, 32], strides = [1, 1]} : vector<240x32xf32> to vector<32x32xf32>
    %30 = vector.extract_strided_slice %0 {offsets = [160, 0], sizes = [32, 32], strides = [1, 1]} : vector<240x32xf32> to vector<32x32xf32>
    %cst_7 = arith.constant 0.000000e+00 : f32
    %31 = vector.broadcast %cst_7 : f32 to vector<8x32xf32>
    %cst_8 = arith.constant 0.000000e+00 : f32
    %32 = vector.broadcast %cst_8 : f32 to vector<8x32xf32>
    %33 = vector.extract_strided_slice %8 {offsets = [0, 0, 0], sizes = [1, 8, 32], strides = [1, 1, 1]} : vector<8x8x32xf32> to vector<1x8x32xf32>
    %34 = vector.shape_cast %33 : vector<1x8x32xf32> to vector<8x32xf32>
    %cst_9 = arith.constant dense<0.000000e+00> : vector<8x32xf32>
    %35 = tpu.matmul %31, %27, %cst_9 {dimension_numbers = #tpu.dot_dimension_numbers<[1], [0], [0], [1], [0, 0, 1, 1], [], []>} : vector<8x32xf32>, vector<32x32xf32>, vector<8x32xf32> -> vector<8x32xf32>
    %36 = arith.addf %34, %35 : vector<8x32xf32>
    %37 = vector.extract_strided_slice %14 {offsets = [0, 0, 0], sizes = [1, 8, 32], strides = [1, 1, 1]} : vector<8x8x32xf32> to vector<1x8x32xf32>
    %38 = vector.shape_cast %37 : vector<1x8x32xf32> to vector<8x32xf32>
    %cst_10 = arith.constant dense<0.000000e+00> : vector<8x32xf32>
    %39 = tpu.matmul %31, %28, %cst_10 {dimension_numbers = #tpu.dot_dimension_numbers<[1], [0], [0], [1], [0, 0, 1, 1], [], []>} : vector<8x32xf32>, vector<32x32xf32>, vector<8x32xf32> -> vector<8x32xf32>
    %40 = arith.addf %38, %39 : vector<8x32xf32>
    %41 = vector.extract_strided_slice %20 {offsets = [0, 0, 0], sizes = [1, 8, 32], strides = [1, 1, 1]} : vector<8x8x32xf32> to vector<1x8x32xf32>
    %42 = vector.shape_cast %41 : vector<1x8x32xf32> to vector<8x32xf32>
    %cst_11 = arith.constant dense<0.000000e+00> : vector<8x32xf32>
    %43 = tpu.matmul %31, %29, %cst_11 {dimension_numbers = #tpu.dot_dimension_numbers<[1], [0], [0], [1], [0, 0, 1, 1], [], []>} : vector<8x32xf32>, vector<32x32xf32>, vector<8x32xf32> -> vector<8x32xf32>
    %44 = arith.addf %42, %43 : vector<8x32xf32>
    %45 = vector.extract_strided_slice %26 {offsets = [0, 0, 0], sizes = [1, 8, 32], strides = [1, 1, 1]} : vector<8x8x32xf32> to vector<1x8x32xf32>
    %46 = vector.shape_cast %45 : vector<1x8x32xf32> to vector<8x32xf32>
    %cst_12 = arith.constant dense<0.000000e+00> : vector<8x32xf32>
    %47 = tpu.matmul %31, %30, %cst_12 {dimension_numbers = #tpu.dot_dimension_numbers<[1], [0], [0], [1], [0, 0, 1, 1], [], []>} : vector<8x32xf32>, vector<32x32xf32>, vector<8x32xf32> -> vector<8x32xf32>
    %48 = arith.addf %46, %47 : vector<8x32xf32>
    %49 = arith.negf %36 : vector<8x32xf32>
    %50 = math.exp %49 : vector<8x32xf32>
    %cst_13 = arith.constant 1.000000e+00 : f32
    %51 = vector.broadcast %cst_13 : f32 to vector<8x32xf32>
    %52 = arith.addf %51, %50 : vector<8x32xf32>
    %53 = arith.divf %51, %52 : vector<8x32xf32>
    %54 = arith.negf %40 : vector<8x32xf32>
    %55 = math.exp %54 : vector<8x32xf32>
    %cst_14 = arith.constant 1.000000e+00 : f32
    %56 = vector.broadcast %cst_14 : f32 to vector<8x32xf32>
    %57 = arith.addf %56, %55 : vector<8x32xf32>
    %58 = arith.divf %56, %57 : vector<8x32xf32>
    %59 = math.tanh %44 : vector<8x32xf32>
    %60 = arith.negf %48 : vector<8x32xf32>
    %61 = math.exp %60 : vector<8x32xf32>
    %cst_15 = arith.constant 1.000000e+00 : f32
    %62 = vector.broadcast %cst_15 : f32 to vector<8x32xf32>
    %63 = arith.addf %62, %61 : vector<8x32xf32>
    %64 = arith.divf %62, %63 : vector<8x32xf32>
    %65 = arith.mulf %58, %32 : vector<8x32xf32>
    %66 = arith.mulf %53, %59 : vector<8x32xf32>
    %67 = arith.addf %65, %66 : vector<8x32xf32>
    %68 = math.tanh %67 : vector<8x32xf32>
    %69 = arith.mulf %64, %68 : vector<8x32xf32>
    %70 = vector.extract_strided_slice %8 {offsets = [1, 0, 0], sizes = [1, 8, 32], strides = [1, 1, 1]} : vector<8x8x32xf32> to vector<1x8x32xf32>
    %71 = vector.shape_cast %70 : vector<1x8x32xf32> to vector<8x32xf32>
    %cst_16 = arith.constant dense<0.000000e+00> : vector<8x32xf32>
    %72 = tpu.matmul %69, %27, %cst_16 {dimension_numbers = #tpu.dot_dimension_numbers<[1], [0], [0], [1], [0, 0, 1, 1], [], []>} : vector<8x32xf32>, vector<32x32xf32>, vector<8x32xf32> -> vector<8x32xf32>
    %73 = arith.addf %71, %72 : vector<8x32xf32>
    %74 = vector.extract_strided_slice %14 {offsets = [1, 0, 0], sizes = [1, 8, 32], strides = [1, 1, 1]} : vector<8x8x32xf32> to vector<1x8x32xf32>
    %75 = vector.shape_cast %74 : vector<1x8x32xf32> to vector<8x32xf32>
    %cst_17 = arith.constant dense<0.000000e+00> : vector<8x32xf32>
    %76 = tpu.matmul %69, %28, %cst_17 {dimension_numbers = #tpu.dot_dimension_numbers<[1], [0], [0], [1], [0, 0, 1, 1], [], []>} : vector<8x32xf32>, vector<32x32xf32>, vector<8x32xf32> -> vector<8x32xf32>
    %77 = arith.addf %75, %76 : vector<8x32xf32>
    %78 = vector.extract_strided_slice %20 {offsets = [1, 0, 0], sizes = [1, 8, 32], strides = [1, 1, 1]} : vector<8x8x32xf32> to vector<1x8x32xf32>
    %79 = vector.shape_cast %78 : vector<1x8x32xf32> to vector<8x32xf32>
    %cst_18 = arith.constant dense<0.000000e+00> : vector<8x32xf32>
    %80 = tpu.matmul %69, %29, %cst_18 {dimension_numbers = #tpu.dot_dimension_numbers<[1], [0], [0], [1], [0, 0, 1, 1], [], []>} : vector<8x32xf32>, vector<32x32xf32>, vector<8x32xf32> -> vector<8x32xf32>
    %81 = arith.addf %79, %80 : vector<8x32xf32>
    %82 = vector.extract_strided_slice %26 {offsets = [1, 0, 0], sizes = [1, 8, 32], strides = [1, 1, 1]} : vector<8x8x32xf32> to vector<1x8x32xf32>
    %83 = vector.shape_cast %82 : vector<1x8x32xf32> to vector<8x32xf32>
    %cst_19 = arith.constant dense<0.000000e+00> : vector<8x32xf32>
    %84 = tpu.matmul %69, %30, %cst_19 {dimension_numbers = #tpu.dot_dimension_numbers<[1], [0], [0], [1], [0, 0, 1, 1], [], []>} : vector<8x32xf32>, vector<32x32xf32>, vector<8x32xf32> -> vector<8x32xf32>
    %85 = arith.addf %83, %84 : vector<8x32xf32>
    %86 = arith.negf %73 : vector<8x32xf32>
    %87 = math.exp %86 : vector<8x32xf32>
    %cst_20 = arith.constant 1.000000e+00 : f32
    %88 = vector.broadcast %cst_20 : f32 to vector<8x32xf32>
    %89 = arith.addf %88, %87 : vector<8x32xf32>
    %90 = arith.divf %88, %89 : vector<8x32xf32>
    %91 = arith.negf %77 : vector<8x32xf32>
    %92 = math.exp %91 : vector<8x32xf32>
    %cst_21 = arith.constant 1.000000e+00 : f32
    %93 = vector.broadcast %cst_21 : f32 to vector<8x32xf32>
    %94 = arith.addf %93, %92 : vector<8x32xf32>
    %95 = arith.divf %93, %94 : vector<8x32xf32>
    %96 = math.tanh %81 : vector<8x32xf32>
    %97 = arith.negf %85 : vector<8x32xf32>
    %98 = math.exp %97 : vector<8x32xf32>
    %cst_22 = arith.constant 1.000000e+00 : f32
    %99 = vector.broadcast %cst_22 : f32 to vector<8x32xf32>
    %100 = arith.addf %99, %98 : vector<8x32xf32>
    %101 = arith.divf %99, %100 : vector<8x32xf32>
    %102 = arith.mulf %95, %67 : vector<8x32xf32>
    %103 = arith.mulf %90, %96 : vector<8x32xf32>
    %104 = arith.addf %102, %103 : vector<8x32xf32>
    %105 = math.tanh %104 : vector<8x32xf32>
    %106 = arith.mulf %101, %105 : vector<8x32xf32>
    %107 = vector.extract_strided_slice %8 {offsets = [2, 0, 0], sizes = [1, 8, 32], strides = [1, 1, 1]} : vector<8x8x32xf32> to vector<1x8x32xf32>
    %108 = vector.shape_cast %107 : vector<1x8x32xf32> to vector<8x32xf32>
    %cst_23 = arith.constant dense<0.000000e+00> : vector<8x32xf32>
    %109 = tpu.matmul %106, %27, %cst_23 {dimension_numbers = #tpu.dot_dimension_numbers<[1], [0], [0], [1], [0, 0, 1, 1], [], []>} : vector<8x32xf32>, vector<32x32xf32>, vector<8x32xf32> -> vector<8x32xf32>
    %110 = arith.addf %108, %109 : vector<8x32xf32>
    %111 = vector.extract_strided_slice %14 {offsets = [2, 0, 0], sizes = [1, 8, 32], strides = [1, 1, 1]} : vector<8x8x32xf32> to vector<1x8x32xf32>
    %112 = vector.shape_cast %111 : vector<1x8x32xf32> to vector<8x32xf32>
    %cst_24 = arith.constant dense<0.000000e+00> : vector<8x32xf32>
    %113 = tpu.matmul %106, %28, %cst_24 {dimension_numbers = #tpu.dot_dimension_numbers<[1], [0], [0], [1], [0, 0, 1, 1], [], []>} : vector<8x32xf32>, vector<32x32xf32>, vector<8x32xf32> -> vector<8x32xf32>
    %114 = arith.addf %112, %113 : vector<8x32xf32>
    %115 = vector.extract_strided_slice %20 {offsets = [2, 0, 0], sizes = [1, 8, 32], strides = [1, 1, 1]} : vector<8x8x32xf32> to vector<1x8x32xf32>
    %116 = vector.shape_cast %115 : vector<1x8x32xf32> to vector<8x32xf32>
    %cst_25 = arith.constant dense<0.000000e+00> : vector<8x32xf32>
    %117 = tpu.matmul %106, %29, %cst_25 {dimension_numbers = #tpu.dot_dimension_numbers<[1], [0], [0], [1], [0, 0, 1, 1], [], []>} : vector<8x32xf32>, vector<32x32xf32>, vector<8x32xf32> -> vector<8x32xf32>
    %118 = arith.addf %116, %117 : vector<8x32xf32>
    %119 = vector.extract_strided_slice %26 {offsets = [2, 0, 0], sizes = [1, 8, 32], strides = [1, 1, 1]} : vector<8x8x32xf32> to vector<1x8x32xf32>
    %120 = vector.shape_cast %119 : vector<1x8x32xf32> to vector<8x32xf32>
    %cst_26 = arith.constant dense<0.000000e+00> : vector<8x32xf32>
    %121 = tpu.matmul %106, %30, %cst_26 {dimension_numbers = #tpu.dot_dimension_numbers<[1], [0], [0], [1], [0, 0, 1, 1], [], []>} : vector<8x32xf32>, vector<32x32xf32>, vector<8x32xf32> -> vector<8x32xf32>
    %122 = arith.addf %120, %121 : vector<8x32xf32>
    %123 = arith.negf %110 : vector<8x32xf32>
    %124 = math.exp %123 : vector<8x32xf32>
    %cst_27 = arith.constant 1.000000e+00 : f32
    %125 = vector.broadcast %cst_27 : f32 to vector<8x32xf32>
    %126 = arith.addf %125, %124 : vector<8x32xf32>
    %127 = arith.divf %125, %126 : vector<8x32xf32>
    %128 = arith.negf %114 : vector<8x32xf32>
    %129 = math.exp %128 : vector<8x32xf32>
    %cst_28 = arith.constant 1.000000e+00 : f32
    %130 = vector.broadcast %cst_28 : f32 to vector<8x32xf32>
    %131 = arith.addf %130, %129 : vector<8x32xf32>
    %132 = arith.divf %130, %131 : vector<8x32xf32>
    %133 = math.tanh %118 : vector<8x32xf32>
    %134 = arith.negf %122 : vector<8x32xf32>
    %135 = math.exp %134 : vector<8x32xf32>
    %cst_29 = arith.constant 1.000000e+00 : f32
    %136 = vector.broadcast %cst_29 : f32 to vector<8x32xf32>
    %137 = arith.addf %136, %135 : vector<8x32xf32>
    %138 = arith.divf %136, %137 : vector<8x32xf32>
    %139 = arith.mulf %132, %104 : vector<8x32xf32>
    %140 = arith.mulf %127, %133 : vector<8x32xf32>
    %141 = arith.addf %139, %140 : vector<8x32xf32>
    %142 = math.tanh %141 : vector<8x32xf32>
    %143 = arith.mulf %138, %142 : vector<8x32xf32>
    %144 = vector.extract_strided_slice %8 {offsets = [3, 0, 0], sizes = [1, 8, 32], strides = [1, 1, 1]} : vector<8x8x32xf32> to vector<1x8x32xf32>
    %145 = vector.shape_cast %144 : vector<1x8x32xf32> to vector<8x32xf32>
    %cst_30 = arith.constant dense<0.000000e+00> : vector<8x32xf32>
    %146 = tpu.matmul %143, %27, %cst_30 {dimension_numbers = #tpu.dot_dimension_numbers<[1], [0], [0], [1], [0, 0, 1, 1], [], []>} : vector<8x32xf32>, vector<32x32xf32>, vector<8x32xf32> -> vector<8x32xf32>
    %147 = arith.addf %145, %146 : vector<8x32xf32>
    %148 = vector.extract_strided_slice %14 {offsets = [3, 0, 0], sizes = [1, 8, 32], strides = [1, 1, 1]} : vector<8x8x32xf32> to vector<1x8x32xf32>
    %149 = vector.shape_cast %148 : vector<1x8x32xf32> to vector<8x32xf32>
    %cst_31 = arith.constant dense<0.000000e+00> : vector<8x32xf32>
    %150 = tpu.matmul %143, %28, %cst_31 {dimension_numbers = #tpu.dot_dimension_numbers<[1], [0], [0], [1], [0, 0, 1, 1], [], []>} : vector<8x32xf32>, vector<32x32xf32>, vector<8x32xf32> -> vector<8x32xf32>
    %151 = arith.addf %149, %150 : vector<8x32xf32>
    %152 = vector.extract_strided_slice %20 {offsets = [3, 0, 0], sizes = [1, 8, 32], strides = [1, 1, 1]} : vector<8x8x32xf32> to vector<1x8x32xf32>
    %153 = vector.shape_cast %152 : vector<1x8x32xf32> to vector<8x32xf32>
    %cst_32 = arith.constant dense<0.000000e+00> : vector<8x32xf32>
    %154 = tpu.matmul %143, %29, %cst_32 {dimension_numbers = #tpu.dot_dimension_numbers<[1], [0], [0], [1], [0, 0, 1, 1], [], []>} : vector<8x32xf32>, vector<32x32xf32>, vector<8x32xf32> -> vector<8x32xf32>
    %155 = arith.addf %153, %154 : vector<8x32xf32>
    %156 = vector.extract_strided_slice %26 {offsets = [3, 0, 0], sizes = [1, 8, 32], strides = [1, 1, 1]} : vector<8x8x32xf32> to vector<1x8x32xf32>
    %157 = vector.shape_cast %156 : vector<1x8x32xf32> to vector<8x32xf32>
    %cst_33 = arith.constant dense<0.000000e+00> : vector<8x32xf32>
    %158 = tpu.matmul %143, %30, %cst_33 {dimension_numbers = #tpu.dot_dimension_numbers<[1], [0], [0], [1], [0, 0, 1, 1], [], []>} : vector<8x32xf32>, vector<32x32xf32>, vector<8x32xf32> -> vector<8x32xf32>
    %159 = arith.addf %157, %158 : vector<8x32xf32>
    %160 = arith.negf %147 : vector<8x32xf32>
    %161 = math.exp %160 : vector<8x32xf32>
    %cst_34 = arith.constant 1.000000e+00 : f32
    %162 = vector.broadcast %cst_34 : f32 to vector<8x32xf32>
    %163 = arith.addf %162, %161 : vector<8x32xf32>
    %164 = arith.divf %162, %163 : vector<8x32xf32>
    %165 = arith.negf %151 : vector<8x32xf32>
    %166 = math.exp %165 : vector<8x32xf32>
    %cst_35 = arith.constant 1.000000e+00 : f32
    %167 = vector.broadcast %cst_35 : f32 to vector<8x32xf32>
    %168 = arith.addf %167, %166 : vector<8x32xf32>
    %169 = arith.divf %167, %168 : vector<8x32xf32>
    %170 = math.tanh %155 : vector<8x32xf32>
    %171 = arith.negf %159 : vector<8x32xf32>
    %172 = math.exp %171 : vector<8x32xf32>
    %cst_36 = arith.constant 1.000000e+00 : f32
    %173 = vector.broadcast %cst_36 : f32 to vector<8x32xf32>
    %174 = arith.addf %173, %172 : vector<8x32xf32>
    %175 = arith.divf %173, %174 : vector<8x32xf32>
    %176 = arith.mulf %169, %141 : vector<8x32xf32>
    %177 = arith.mulf %164, %170 : vector<8x32xf32>
    %178 = arith.addf %176, %177 : vector<8x32xf32>
    %179 = math.tanh %178 : vector<8x32xf32>
    %180 = arith.mulf %175, %179 : vector<8x32xf32>
    %181 = vector.extract_strided_slice %8 {offsets = [4, 0, 0], sizes = [1, 8, 32], strides = [1, 1, 1]} : vector<8x8x32xf32> to vector<1x8x32xf32>
    %182 = vector.shape_cast %181 : vector<1x8x32xf32> to vector<8x32xf32>
    %cst_37 = arith.constant dense<0.000000e+00> : vector<8x32xf32>
    %183 = tpu.matmul %180, %27, %cst_37 {dimension_numbers = #tpu.dot_dimension_numbers<[1], [0], [0], [1], [0, 0, 1, 1], [], []>} : vector<8x32xf32>, vector<32x32xf32>, vector<8x32xf32> -> vector<8x32xf32>
    %184 = arith.addf %182, %183 : vector<8x32xf32>
    %185 = vector.extract_strided_slice %14 {offsets = [4, 0, 0], sizes = [1, 8, 32], strides = [1, 1, 1]} : vector<8x8x32xf32> to vector<1x8x32xf32>
    %186 = vector.shape_cast %185 : vector<1x8x32xf32> to vector<8x32xf32>
    %cst_38 = arith.constant dense<0.000000e+00> : vector<8x32xf32>
    %187 = tpu.matmul %180, %28, %cst_38 {dimension_numbers = #tpu.dot_dimension_numbers<[1], [0], [0], [1], [0, 0, 1, 1], [], []>} : vector<8x32xf32>, vector<32x32xf32>, vector<8x32xf32> -> vector<8x32xf32>
    %188 = arith.addf %186, %187 : vector<8x32xf32>
    %189 = vector.extract_strided_slice %20 {offsets = [4, 0, 0], sizes = [1, 8, 32], strides = [1, 1, 1]} : vector<8x8x32xf32> to vector<1x8x32xf32>
    %190 = vector.shape_cast %189 : vector<1x8x32xf32> to vector<8x32xf32>
    %cst_39 = arith.constant dense<0.000000e+00> : vector<8x32xf32>
    %191 = tpu.matmul %180, %29, %cst_39 {dimension_numbers = #tpu.dot_dimension_numbers<[1], [0], [0], [1], [0, 0, 1, 1], [], []>} : vector<8x32xf32>, vector<32x32xf32>, vector<8x32xf32> -> vector<8x32xf32>
    %192 = arith.addf %190, %191 : vector<8x32xf32>
    %193 = vector.extract_strided_slice %26 {offsets = [4, 0, 0], sizes = [1, 8, 32], strides = [1, 1, 1]} : vector<8x8x32xf32> to vector<1x8x32xf32>
    %194 = vector.shape_cast %193 : vector<1x8x32xf32> to vector<8x32xf32>
    %cst_40 = arith.constant dense<0.000000e+00> : vector<8x32xf32>
    %195 = tpu.matmul %180, %30, %cst_40 {dimension_numbers = #tpu.dot_dimension_numbers<[1], [0], [0], [1], [0, 0, 1, 1], [], []>} : vector<8x32xf32>, vector<32x32xf32>, vector<8x32xf32> -> vector<8x32xf32>
    %196 = arith.addf %194, %195 : vector<8x32xf32>
    %197 = arith.negf %184 : vector<8x32xf32>
    %198 = math.exp %197 : vector<8x32xf32>
    %cst_41 = arith.constant 1.000000e+00 : f32
    %199 = vector.broadcast %cst_41 : f32 to vector<8x32xf32>
    %200 = arith.addf %199, %198 : vector<8x32xf32>
    %201 = arith.divf %199, %200 : vector<8x32xf32>
    %202 = arith.negf %188 : vector<8x32xf32>
    %203 = math.exp %202 : vector<8x32xf32>
    %cst_42 = arith.constant 1.000000e+00 : f32
    %204 = vector.broadcast %cst_42 : f32 to vector<8x32xf32>
    %205 = arith.addf %204, %203 : vector<8x32xf32>
    %206 = arith.divf %204, %205 : vector<8x32xf32>
    %207 = math.tanh %192 : vector<8x32xf32>
    %208 = arith.negf %196 : vector<8x32xf32>
    %209 = math.exp %208 : vector<8x32xf32>
    %cst_43 = arith.constant 1.000000e+00 : f32
    %210 = vector.broadcast %cst_43 : f32 to vector<8x32xf32>
    %211 = arith.addf %210, %209 : vector<8x32xf32>
    %212 = arith.divf %210, %211 : vector<8x32xf32>
    %213 = arith.mulf %206, %178 : vector<8x32xf32>
    %214 = arith.mulf %201, %207 : vector<8x32xf32>
    %215 = arith.addf %213, %214 : vector<8x32xf32>
    %216 = math.tanh %215 : vector<8x32xf32>
    %217 = arith.mulf %212, %216 : vector<8x32xf32>
    %218 = vector.extract_strided_slice %8 {offsets = [5, 0, 0], sizes = [1, 8, 32], strides = [1, 1, 1]} : vector<8x8x32xf32> to vector<1x8x32xf32>
    %219 = vector.shape_cast %218 : vector<1x8x32xf32> to vector<8x32xf32>
    %cst_44 = arith.constant dense<0.000000e+00> : vector<8x32xf32>
    %220 = tpu.matmul %217, %27, %cst_44 {dimension_numbers = #tpu.dot_dimension_numbers<[1], [0], [0], [1], [0, 0, 1, 1], [], []>} : vector<8x32xf32>, vector<32x32xf32>, vector<8x32xf32> -> vector<8x32xf32>
    %221 = arith.addf %219, %220 : vector<8x32xf32>
    %222 = vector.extract_strided_slice %14 {offsets = [5, 0, 0], sizes = [1, 8, 32], strides = [1, 1, 1]} : vector<8x8x32xf32> to vector<1x8x32xf32>
    %223 = vector.shape_cast %222 : vector<1x8x32xf32> to vector<8x32xf32>
    %cst_45 = arith.constant dense<0.000000e+00> : vector<8x32xf32>
    %224 = tpu.matmul %217, %28, %cst_45 {dimension_numbers = #tpu.dot_dimension_numbers<[1], [0], [0], [1], [0, 0, 1, 1], [], []>} : vector<8x32xf32>, vector<32x32xf32>, vector<8x32xf32> -> vector<8x32xf32>
    %225 = arith.addf %223, %224 : vector<8x32xf32>
    %226 = vector.extract_strided_slice %20 {offsets = [5, 0, 0], sizes = [1, 8, 32], strides = [1, 1, 1]} : vector<8x8x32xf32> to vector<1x8x32xf32>
    %227 = vector.shape_cast %226 : vector<1x8x32xf32> to vector<8x32xf32>
    %cst_46 = arith.constant dense<0.000000e+00> : vector<8x32xf32>
    %228 = tpu.matmul %217, %29, %cst_46 {dimension_numbers = #tpu.dot_dimension_numbers<[1], [0], [0], [1], [0, 0, 1, 1], [], []>} : vector<8x32xf32>, vector<32x32xf32>, vector<8x32xf32> -> vector<8x32xf32>
    %229 = arith.addf %227, %228 : vector<8x32xf32>
    %230 = vector.extract_strided_slice %26 {offsets = [5, 0, 0], sizes = [1, 8, 32], strides = [1, 1, 1]} : vector<8x8x32xf32> to vector<1x8x32xf32>
    %231 = vector.shape_cast %230 : vector<1x8x32xf32> to vector<8x32xf32>
    %cst_47 = arith.constant dense<0.000000e+00> : vector<8x32xf32>
    %232 = tpu.matmul %217, %30, %cst_47 {dimension_numbers = #tpu.dot_dimension_numbers<[1], [0], [0], [1], [0, 0, 1, 1], [], []>} : vector<8x32xf32>, vector<32x32xf32>, vector<8x32xf32> -> vector<8x32xf32>
    %233 = arith.addf %231, %232 : vector<8x32xf32>
    %234 = arith.negf %221 : vector<8x32xf32>
    %235 = math.exp %234 : vector<8x32xf32>
    %cst_48 = arith.constant 1.000000e+00 : f32
    %236 = vector.broadcast %cst_48 : f32 to vector<8x32xf32>
    %237 = arith.addf %236, %235 : vector<8x32xf32>
    %238 = arith.divf %236, %237 : vector<8x32xf32>
    %239 = arith.negf %225 : vector<8x32xf32>
    %240 = math.exp %239 : vector<8x32xf32>
    %cst_49 = arith.constant 1.000000e+00 : f32
    %241 = vector.broadcast %cst_49 : f32 to vector<8x32xf32>
    %242 = arith.addf %241, %240 : vector<8x32xf32>
    %243 = arith.divf %241, %242 : vector<8x32xf32>
    %244 = math.tanh %229 : vector<8x32xf32>
    %245 = arith.negf %233 : vector<8x32xf32>
    %246 = math.exp %245 : vector<8x32xf32>
    %cst_50 = arith.constant 1.000000e+00 : f32
    %247 = vector.broadcast %cst_50 : f32 to vector<8x32xf32>
    %248 = arith.addf %247, %246 : vector<8x32xf32>
    %249 = arith.divf %247, %248 : vector<8x32xf32>
    %250 = arith.mulf %243, %215 : vector<8x32xf32>
    %251 = arith.mulf %238, %244 : vector<8x32xf32>
    %252 = arith.addf %250, %251 : vector<8x32xf32>
    %253 = math.tanh %252 : vector<8x32xf32>
    %254 = arith.mulf %249, %253 : vector<8x32xf32>
    %255 = vector.extract_strided_slice %8 {offsets = [6, 0, 0], sizes = [1, 8, 32], strides = [1, 1, 1]} : vector<8x8x32xf32> to vector<1x8x32xf32>
    %256 = vector.shape_cast %255 : vector<1x8x32xf32> to vector<8x32xf32>
    %cst_51 = arith.constant dense<0.000000e+00> : vector<8x32xf32>
    %257 = tpu.matmul %254, %27, %cst_51 {dimension_numbers = #tpu.dot_dimension_numbers<[1], [0], [0], [1], [0, 0, 1, 1], [], []>} : vector<8x32xf32>, vector<32x32xf32>, vector<8x32xf32> -> vector<8x32xf32>
    %258 = arith.addf %256, %257 : vector<8x32xf32>
    %259 = vector.extract_strided_slice %14 {offsets = [6, 0, 0], sizes = [1, 8, 32], strides = [1, 1, 1]} : vector<8x8x32xf32> to vector<1x8x32xf32>
    %260 = vector.shape_cast %259 : vector<1x8x32xf32> to vector<8x32xf32>
    %cst_52 = arith.constant dense<0.000000e+00> : vector<8x32xf32>
    %261 = tpu.matmul %254, %28, %cst_52 {dimension_numbers = #tpu.dot_dimension_numbers<[1], [0], [0], [1], [0, 0, 1, 1], [], []>} : vector<8x32xf32>, vector<32x32xf32>, vector<8x32xf32> -> vector<8x32xf32>
    %262 = arith.addf %260, %261 : vector<8x32xf32>
    %263 = vector.extract_strided_slice %20 {offsets = [6, 0, 0], sizes = [1, 8, 32], strides = [1, 1, 1]} : vector<8x8x32xf32> to vector<1x8x32xf32>
    %264 = vector.shape_cast %263 : vector<1x8x32xf32> to vector<8x32xf32>
    %cst_53 = arith.constant dense<0.000000e+00> : vector<8x32xf32>
    %265 = tpu.matmul %254, %29, %cst_53 {dimension_numbers = #tpu.dot_dimension_numbers<[1], [0], [0], [1], [0, 0, 1, 1], [], []>} : vector<8x32xf32>, vector<32x32xf32>, vector<8x32xf32> -> vector<8x32xf32>
    %266 = arith.addf %264, %265 : vector<8x32xf32>
    %267 = vector.extract_strided_slice %26 {offsets = [6, 0, 0], sizes = [1, 8, 32], strides = [1, 1, 1]} : vector<8x8x32xf32> to vector<1x8x32xf32>
    %268 = vector.shape_cast %267 : vector<1x8x32xf32> to vector<8x32xf32>
    %cst_54 = arith.constant dense<0.000000e+00> : vector<8x32xf32>
    %269 = tpu.matmul %254, %30, %cst_54 {dimension_numbers = #tpu.dot_dimension_numbers<[1], [0], [0], [1], [0, 0, 1, 1], [], []>} : vector<8x32xf32>, vector<32x32xf32>, vector<8x32xf32> -> vector<8x32xf32>
    %270 = arith.addf %268, %269 : vector<8x32xf32>
    %271 = arith.negf %258 : vector<8x32xf32>
    %272 = math.exp %271 : vector<8x32xf32>
    %cst_55 = arith.constant 1.000000e+00 : f32
    %273 = vector.broadcast %cst_55 : f32 to vector<8x32xf32>
    %274 = arith.addf %273, %272 : vector<8x32xf32>
    %275 = arith.divf %273, %274 : vector<8x32xf32>
    %276 = arith.negf %262 : vector<8x32xf32>
    %277 = math.exp %276 : vector<8x32xf32>
    %cst_56 = arith.constant 1.000000e+00 : f32
    %278 = vector.broadcast %cst_56 : f32 to vector<8x32xf32>
    %279 = arith.addf %278, %277 : vector<8x32xf32>
    %280 = arith.divf %278, %279 : vector<8x32xf32>
    %281 = math.tanh %266 : vector<8x32xf32>
    %282 = arith.negf %270 : vector<8x32xf32>
    %283 = math.exp %282 : vector<8x32xf32>
    %cst_57 = arith.constant 1.000000e+00 : f32
    %284 = vector.broadcast %cst_57 : f32 to vector<8x32xf32>
    %285 = arith.addf %284, %283 : vector<8x32xf32>
    %286 = arith.divf %284, %285 : vector<8x32xf32>
    %287 = arith.mulf %280, %252 : vector<8x32xf32>
    %288 = arith.mulf %275, %281 : vector<8x32xf32>
    %289 = arith.addf %287, %288 : vector<8x32xf32>
    %290 = math.tanh %289 : vector<8x32xf32>
    %291 = arith.mulf %286, %290 : vector<8x32xf32>
    %292 = vector.extract_strided_slice %8 {offsets = [7, 0, 0], sizes = [1, 8, 32], strides = [1, 1, 1]} : vector<8x8x32xf32> to vector<1x8x32xf32>
    %293 = vector.shape_cast %292 : vector<1x8x32xf32> to vector<8x32xf32>
    %cst_58 = arith.constant dense<0.000000e+00> : vector<8x32xf32>
    %294 = tpu.matmul %291, %27, %cst_58 {dimension_numbers = #tpu.dot_dimension_numbers<[1], [0], [0], [1], [0, 0, 1, 1], [], []>} : vector<8x32xf32>, vector<32x32xf32>, vector<8x32xf32> -> vector<8x32xf32>
    %295 = arith.addf %293, %294 : vector<8x32xf32>
    %296 = vector.extract_strided_slice %14 {offsets = [7, 0, 0], sizes = [1, 8, 32], strides = [1, 1, 1]} : vector<8x8x32xf32> to vector<1x8x32xf32>
    %297 = vector.shape_cast %296 : vector<1x8x32xf32> to vector<8x32xf32>
    %cst_59 = arith.constant dense<0.000000e+00> : vector<8x32xf32>
    %298 = tpu.matmul %291, %28, %cst_59 {dimension_numbers = #tpu.dot_dimension_numbers<[1], [0], [0], [1], [0, 0, 1, 1], [], []>} : vector<8x32xf32>, vector<32x32xf32>, vector<8x32xf32> -> vector<8x32xf32>
    %299 = arith.addf %297, %298 : vector<8x32xf32>
    %300 = vector.extract_strided_slice %20 {offsets = [7, 0, 0], sizes = [1, 8, 32], strides = [1, 1, 1]} : vector<8x8x32xf32> to vector<1x8x32xf32>
    %301 = vector.shape_cast %300 : vector<1x8x32xf32> to vector<8x32xf32>
    %cst_60 = arith.constant dense<0.000000e+00> : vector<8x32xf32>
    %302 = tpu.matmul %291, %29, %cst_60 {dimension_numbers = #tpu.dot_dimension_numbers<[1], [0], [0], [1], [0, 0, 1, 1], [], []>} : vector<8x32xf32>, vector<32x32xf32>, vector<8x32xf32> -> vector<8x32xf32>
    %303 = arith.addf %301, %302 : vector<8x32xf32>
    %304 = vector.extract_strided_slice %26 {offsets = [7, 0, 0], sizes = [1, 8, 32], strides = [1, 1, 1]} : vector<8x8x32xf32> to vector<1x8x32xf32>
    %305 = vector.shape_cast %304 : vector<1x8x32xf32> to vector<8x32xf32>
    %cst_61 = arith.constant dense<0.000000e+00> : vector<8x32xf32>
    %306 = tpu.matmul %291, %30, %cst_61 {dimension_numbers = #tpu.dot_dimension_numbers<[1], [0], [0], [1], [0, 0, 1, 1], [], []>} : vector<8x32xf32>, vector<32x32xf32>, vector<8x32xf32> -> vector<8x32xf32>
    %307 = arith.addf %305, %306 : vector<8x32xf32>
    %308 = arith.negf %295 : vector<8x32xf32>
    %309 = math.exp %308 : vector<8x32xf32>
    %cst_62 = arith.constant 1.000000e+00 : f32
    %310 = vector.broadcast %cst_62 : f32 to vector<8x32xf32>
    %311 = arith.addf %310, %309 : vector<8x32xf32>
    %312 = arith.divf %310, %311 : vector<8x32xf32>
    %313 = arith.negf %299 : vector<8x32xf32>
    %314 = math.exp %313 : vector<8x32xf32>
    %cst_63 = arith.constant 1.000000e+00 : f32
    %315 = vector.broadcast %cst_63 : f32 to vector<8x32xf32>
    %316 = arith.addf %315, %314 : vector<8x32xf32>
    %317 = arith.divf %315, %316 : vector<8x32xf32>
    %318 = math.tanh %303 : vector<8x32xf32>
    %319 = arith.negf %307 : vector<8x32xf32>
    %320 = math.exp %319 : vector<8x32xf32>
    %cst_64 = arith.constant 1.000000e+00 : f32
    %321 = vector.broadcast %cst_64 : f32 to vector<8x32xf32>
    %322 = arith.addf %321, %320 : vector<8x32xf32>
    %323 = arith.divf %321, %322 : vector<8x32xf32>
    %324 = arith.mulf %317, %289 : vector<8x32xf32>
    %325 = arith.mulf %312, %318 : vector<8x32xf32>
    %326 = arith.addf %324, %325 : vector<8x32xf32>
    %327 = math.tanh %326 : vector<8x32xf32>
    %328 = arith.mulf %323, %327 : vector<8x32xf32>
    %cst_65 = arith.constant 0.000000e+00 : f32
    %329 = vector.broadcast %cst_65 : f32 to vector<8x8xf32>
    %c0_66 = arith.constant 0 : index
    %c0_67 = arith.constant 0 : index
    %c0_68 = arith.constant 0 : index
    %330 = vector.load %arg3[%c0_66, %c0_67, %c0_68] : memref<4x8x8xf32, #tpu.memory_space<vmem>>, vector<1x8x8xf32>
    %331 = vector.shape_cast %330 : vector<1x8x8xf32> to vector<8x8xf32>
    %c0_69 = arith.constant 0 : index
    %332 = memref.load %arg0[%c0_69] : memref<8xf32, #tpu.memory_space<smem>>
    %333 = vector.broadcast %332 : f32 to vector<8x8xf32>
    %334 = arith.mulf %331, %333 : vector<8x8xf32>
    %335 = arith.addf %329, %334 : vector<8x8xf32>
    %c1 = arith.constant 1 : index
    %c0_70 = arith.constant 0 : index
    %c0_71 = arith.constant 0 : index
    %336 = vector.load %arg3[%c1, %c0_70, %c0_71] : memref<4x8x8xf32, #tpu.memory_space<vmem>>, vector<1x8x8xf32>
    %337 = vector.shape_cast %336 : vector<1x8x8xf32> to vector<8x8xf32>
    %c1_72 = arith.constant 1 : index
    %338 = memref.load %arg0[%c1_72] : memref<8xf32, #tpu.memory_space<smem>>
    %339 = vector.broadcast %338 : f32 to vector<8x8xf32>
    %340 = arith.mulf %337, %339 : vector<8x8xf32>
    %341 = arith.addf %335, %340 : vector<8x8xf32>
    %c2 = arith.constant 2 : index
    %c0_73 = arith.constant 0 : index
    %c0_74 = arith.constant 0 : index
    %342 = vector.load %arg3[%c2, %c0_73, %c0_74] : memref<4x8x8xf32, #tpu.memory_space<vmem>>, vector<1x8x8xf32>
    %343 = vector.shape_cast %342 : vector<1x8x8xf32> to vector<8x8xf32>
    %c2_75 = arith.constant 2 : index
    %344 = memref.load %arg0[%c2_75] : memref<8xf32, #tpu.memory_space<smem>>
    %345 = vector.broadcast %344 : f32 to vector<8x8xf32>
    %346 = arith.mulf %343, %345 : vector<8x8xf32>
    %347 = arith.addf %341, %346 : vector<8x8xf32>
    %c3 = arith.constant 3 : index
    %c0_76 = arith.constant 0 : index
    %c0_77 = arith.constant 0 : index
    %348 = vector.load %arg3[%c3, %c0_76, %c0_77] : memref<4x8x8xf32, #tpu.memory_space<vmem>>, vector<1x8x8xf32>
    %349 = vector.shape_cast %348 : vector<1x8x8xf32> to vector<8x8xf32>
    %c3_78 = arith.constant 3 : index
    %350 = memref.load %arg0[%c3_78] : memref<8xf32, #tpu.memory_space<smem>>
    %351 = vector.broadcast %350 : f32 to vector<8x8xf32>
    %352 = arith.mulf %349, %351 : vector<8x8xf32>
    %353 = arith.addf %347, %352 : vector<8x8xf32>
    %c4 = arith.constant 4 : index
    %354 = memref.load %arg0[%c4] : memref<8xf32, #tpu.memory_space<smem>>
    %355 = vector.broadcast %354 : f32 to vector<8x8xf32>
    %356 = arith.addf %353, %355 : vector<8x8xf32>
    %cst_79 = arith.constant 0.000000e+00 : f32
    %357 = vector.broadcast %cst_79 : f32 to vector<8x8xf32>
    %358 = arith.cmpf oge, %356, %357 : vector<8x8xf32>
    %cst_80 = arith.constant 0.00999999977 : f32
    %359 = vector.broadcast %cst_80 : f32 to vector<8x8xf32>
    %360 = arith.mulf %359, %356 : vector<8x8xf32>
    %361 = arith.select %358, %356, %360 : vector<8x8xi1>, vector<8x8xf32>
    %cst_81 = arith.constant dense<0.000000e+00> : vector<8x8xf32>
    %362 = tpu.matmul %328, %328, %cst_81 {dimension_numbers = #tpu.dot_dimension_numbers<[1], [1], [0], [0], [0, 0, 1, 0], [], []>} : vector<8x32xf32>, vector<8x32xf32>, vector<8x8xf32> -> vector<8x8xf32>
    %363 = arith.mulf %362, %361 : vector<8x8xf32>
    %c0_82 = arith.constant 0 : index
    %c0_83 = arith.constant 0 : index
    %364 = vector.load %arg4[%c0_82, %c0_83] : memref<8x8xf32, #tpu.memory_space<vmem>>, vector<8x8xf32>
    %365 = arith.addf %364, %363 : vector<8x8xf32>
    %cst_84 = arith.constant dense<0xFF800000> : vector<8xf32>
    %366 = vector.multi_reduction <maximumf>, %365, %cst_84 [0] : vector<8x8xf32> to vector<8xf32>
    %367 = vector.shape_cast %366 : vector<8xf32> to vector<1x8xf32>
    %368 = vector.broadcast %367 : vector<1x8xf32> to vector<8x8xf32>
    %369 = arith.subf %365, %368 : vector<8x8xf32>
    %370 = math.exp %369 : vector<8x8xf32>
    %cst_85 = arith.constant dense<0.000000e+00> : vector<8xf32>
    %371 = vector.multi_reduction <add>, %370, %cst_85 [0] : vector<8x8xf32> to vector<8xf32>
    %372 = vector.shape_cast %371 : vector<8xf32> to vector<1x8xf32>
    %373 = tpu.reciprocal %372 : vector<1x8xf32> -> vector<1x8xf32>
    %374 = vector.broadcast %373 : vector<1x8xf32> to vector<8x8xf32>
    %375 = arith.mulf %370, %374 : vector<8x8xf32>
    %cst_86 = arith.constant dense<0.000000e+00> : vector<8x32xf32>
    %376 = tpu.matmul %375, %328, %cst_86 {dimension_numbers = #tpu.dot_dimension_numbers<[1], [0], [0], [1], [0, 0, 1, 1], [], []>} : vector<8x8xf32>, vector<8x32xf32>, vector<8x32xf32> -> vector<8x32xf32>
    %377 = vector.extract_strided_slice %0 {offsets = [200, 0], sizes = [32, 32], strides = [1, 1]} : vector<240x32xf32> to vector<32x32xf32>
    %378 = vector.extract_strided_slice %0 {offsets = [232, 0], sizes = [1, 32], strides = [1, 1]} : vector<240x32xf32> to vector<1x32xf32>
    %cst_87 = arith.constant dense<0.000000e+00> : vector<8x32xf32>
    %379 = tpu.matmul %376, %377, %cst_87 {dimension_numbers = #tpu.dot_dimension_numbers<[1], [0], [0], [1], [0, 0, 1, 1], [], []>} : vector<8x32xf32>, vector<32x32xf32>, vector<8x32xf32> -> vector<8x32xf32>
    %380 = vector.broadcast %378 : vector<1x32xf32> to vector<8x32xf32>
    %381 = arith.addf %379, %380 : vector<8x32xf32>
    %cst_88 = arith.constant 0.000000e+00 : f32
    %382 = vector.broadcast %cst_88 : f32 to vector<8x32xf32>
    %383 = arith.cmpf oge, %381, %382 : vector<8x32xf32>
    %cst_89 = arith.constant 0.00999999977 : f32
    %384 = vector.broadcast %cst_89 : f32 to vector<8x32xf32>
    %385 = arith.mulf %384, %381 : vector<8x32xf32>
    %386 = arith.select %383, %381, %385 : vector<8x32xi1>, vector<8x32xf32>
    %387 = vector.extract_strided_slice %0 {offsets = [235, 0], sizes = [1, 32], strides = [1, 1]} : vector<240x32xf32> to vector<1x32xf32>
    %cst_90 = arith.constant dense<0.000000e+00> : vector<1x8xf32>
    %388 = tpu.matmul %387, %386, %cst_90 {dimension_numbers = #tpu.dot_dimension_numbers<[1], [1], [0], [0], [0, 0, 1, 0], [], []>} : vector<1x32xf32>, vector<8x32xf32>, vector<1x8xf32> -> vector<1x8xf32>
    %c7 = arith.constant 7 : index
    %389 = memref.load %arg0[%c7] : memref<8xf32, #tpu.memory_space<smem>>
    %390 = vector.broadcast %389 : f32 to vector<1x8xf32>
    %391 = arith.addf %388, %390 : vector<1x8xf32>
    %c0_91 = arith.constant 0 : index
    %c0_92 = arith.constant 0 : index
    %392 = vector.load %arg5[%c0_91, %c0_92] : memref<1x8xf32, #tpu.memory_space<vmem>>, vector<1x8xf32>
    tpu.vector_store %arg5[%c0_91, %c0_92], %391 {strides = array<i32>} : memref<1x8xf32, #tpu.memory_space<vmem>>, vector<1x8xf32>,
    return
  }
}

</mosaic_0001>

<bundles_post_ra>
// kernel: tpu_custom_call.1
= control target key start
LH: loop header
LB: loop body
LE: loop exit
PB: predicated region body
PF: predicated region fallthrough
CT: control target
= control target key end

     0   :  { %10 = vsyncpa [#allocation4], 0  ;;  %s5161_s0 = inlined_call_operand.vmem [shape: f32[8], index: 0, kind: input, shape index: {}]   ;;  %s5162_s1 = inlined_call_operand.vmem [shape: f32[8,8,16], index: 1, kind: input, shape index: {}]   ;;  %s5163_s2 = inlined_call_operand.vmem [shape: f32[240,32], index: 2, kind: input, shape index: {}]   ;;  %s5164_s3 = inlined_call_operand.vmem [shape: f32[4,8,8], index: 3, kind: input, shape index: {}]   ;;  %s5165_s4 = inlined_call_operand.vmem [shape: f32[8,8], index: 4, kind: input, shape index: {}]   ;;  %s5166_s5 = inlined_call_operand.hbm [shape: f32[1,8], index: 5, kind: output, shape index: {}]  }
   0x1   :  { %11 = vsyncpa [#allocation3], 0  ;;  %s18_s20 = sshll.u32 %s5161_s0, 4  ;;  %s19_s20 = int_to_ptr.vmem [resolvable:$true] %s18_s20 }
   0x2   :  { %s4299_s21 = scalar_lea.vmem %s19_s20, 16  ;;  %p4304_p1 = scmp.lt.s32.totalorder %s19_s20, %s19_s20 }
   0x3   :  { %p4300_p0 = scmp.ne.s32.totalorder %s19_s20, %s4299_s21  ;;  %p4305_p2 = scmp.lt.s32.totalorder %s4299_s21, %s4299_s21 }
   0x5   :  { %p4306_p3 = por %p4305_p2, %p4304_p1 }
   0x7   :  { %p4307_p4 = pnand %p4306_p3, %p4300_p0 }
   0x9   :  { %4310 = shalt.err (!%p4307_p4)
}
   0xa   :  { %s4335_s22 = smov [#allocation2]  }
   0xb   :  { %21 = dma.vmem_to_smem %s19_s20, 16, %s4335_s22, [#allocation4]  }
   0xc   :  { %4331 = dma.done.wait [#allocation4], 16  }
   0xd   :  { %4332 = vsyncadd [#allocation4], 4294967280 }
   0xe   :  { %33 = sfence }
   0xf   :  { %v35_v0 = vld [vmem:[%s5163_s2 + $0x8] sm:$0xff]  ;;  %v37_v1 = vld [vmem:[%s5163_s2 + $0x18] sm:$0xff]  ;;  %v34_v2 = vld [vmem:[%s5163_s2] sm:$0xff]  ;;  %vm76_vm0 = vcmask 130048   ;;  %v5168_v16 = vmov 0.0   ;;  %vm4337_vm1 = vmmov 0   ;;  %v72_v33 = vlaneseq }
  0x10   :  { %3705 = vmatprep.subr.mxu0 %v35_v0  ;;  %3721 = vmatprep.subr.mxu1 %v37_v1  ;;  %v36_v3 = vld [vmem:[%s5163_s2 + $0x10] sm:$0xff]  ;;  %v64_v4 = vld [vmem:[%s5162_s1] sm:$0xff]  ;;  %v65_v5 = vld [vmem:[%s5162_s1 + $0x8] sm:$0xff]  ;;  %vm533_vm2 = vcmask 261120   ;;  %s3023_s20 = sld [smem:[#allocation2]]  ;;  %vm3127_vm4 = vcmask 64512  }
  0x11   :  { %3706 = vmatpush3.msra.mxu0 %v35_v0  ;;  %3722 = vmatpush3.msra.mxu1 %v37_v1  ;;  %v39_v6 = vld [vmem:[%s5163_s2 + $0x28] sm:$0xff]  ;;  %v41_v7 = vld [vmem:[%s5163_s2 + $0x38] sm:$0xff]  ;;  %v66_v8 = vld [vmem:[%s5162_s1 + $0x10] sm:$0xff]  ;;  %v4598_v34 = vshrl.u32 %v72_v33, 7  ;;  %s3481_s21 = sld [smem:[#allocation2 + $0x1]]  ;;  %s4338_s11 = smov [#allocation5]  }
  0x12   :  { %3707 = vmatprep.subr.mxu0 %v34_v2  ;;  %3723 = vmatprep.subr.mxu1 %v36_v3  ;;  %v67_v9 = vld [vmem:[%s5162_s1 + $0x18] sm:$0xff]  ;;  %v68_v10 = vld [vmem:[%s5162_s1 + $0x20] sm:$0xff]  ;;  %v40_v12 = vld [vmem:[%s5163_s2 + $0x30] sm:$0xff]  ;;  %s3483_s22 = sld [smem:[#allocation2 + $0x2]]  ;;  %s3387_s12 = sshll.u32 %s4338_s11, 4  ;;  %vm3379_vm6 = vcmask 57344   ;;  %s3388_s12 = int_to_ptr.vmem [resolvable:$true] %s3387_s12 }
  0x13   :  { %3708 = vmatpush3.msra.mxu0 %v34_v2  ;;  %3709 = vmatprep.mubr.msk.f32.mxu0 %vm76_vm0, %v64_v4  ;;  %v38_v11 = vld [vmem:[%s5163_s2 + $0x20] sm:$0xff]  ;;  %v69_v13 = vld [vmem:[%s5162_s1 + $0x28] sm:$0xff]  ;;  %v70_v14 = vld [vmem:[%s5162_s1 + $0x30] sm:$0xff]  ;;  %5171 = vst [vmem:[#allocation8_spill] sm:$0xff] %v4598_v34  ;;  %v5167_v35 = vsub.s32 0, %v4598_v34  ;;  %v208_v36 = vsub.s32 1, %v4598_v34  ;;  %p4316_p6 = scmp.lt.s32.totalorder %s3388_s12, %s3388_s12 }
  0x14   :  { %3724 = vmatpush3.msra.mxu1 %v36_v3  ;;  %3725 = vmatprep.mubr.msk.f32.mxu1 %vm76_vm0, %v64_v4  ;;  %v71_v15 = vld [vmem:[%s5162_s1 + $0x38] sm:$0xff]  ;;  %v4459_v19 = vld [vmem:[%s5163_s2 + $0x50] sm:$0xff]  ;;  %v4477_v21 = vld [vmem:[%s5163_s2 + $0x48] sm:$0xff]  ;;  %v317_v58 = vsub.s32 2, %v4598_v34  ;;  %v426_v59 = vsub.s32 3, %v4598_v34  ;;  %s3485_s0 = sld [smem:[#allocation2 + $0x3]] }
  0x15   :  { %3710 = vmatmul.mubr.msk.f32.vlgmr.msra.gmra.mxu0 %vm76_vm0, %v65_v5  ;;  %3726 = vmatmul.mubr.msk.f32.vlgmr.msra.gmra.mxu1 %vm76_vm0, %v65_v5  ;;  %v4443_v17 = vld [vmem:[%s5163_s2 + $0x58] sm:$0xff]  ;;  %v4464_v20 = vld [vmem:[%s5163_s2 + $0x70] sm:$0xff]  ;;  %v4482_v22 = vld [vmem:[%s5163_s2 + $0x68] sm:$0xff]  ;;  %s3486_s1 = sld [smem:[#allocation2 + $0x4]]  ;;  %s4315_s13 = scalar_lea.vmem %s3388_s12, 32 }
  0x16   :  { %3737 = vmatprep.subr.mxu0 %v39_v6  ;;  %3753 = vmatprep.subr.mxu1 %v41_v7  ;;  %v4448_v18 = vld [vmem:[%s5163_s2 + $0x78] sm:$0xff]  ;;  %v4495_v23 = vld [vmem:[%s5163_s2 + $0x40] sm:$0xff]  ;;  %v4529_v27 = vld [vmem:[%s5163_s2 + $0x90] sm:$0xff]  ;;  %s3491_s10 = sld [smem:[#allocation2 + $0x7]] }
  0x17   :  { %3738 = vmatpush3.msra.mxu0 %v39_v6  ;;  %3754 = vmatpush3.msra.mxu1 %v41_v7  ;;  %v4500_v24 = vld [vmem:[%s5163_s2 + $0x60] sm:$0xff]  ;;  %v4515_v25 = vld [vmem:[%s5163_s2 + $0x98] sm:$0xff]  ;;  %v4534_v28 = vld [vmem:[%s5163_s2 + $0xb0] sm:$0xff] }
  0x18   :  { %3712 = vmatprep.mubr.msk.f32.mxu0 %vm76_vm0, %v66_v8  ;;  %3728 = vmatprep.mubr.msk.f32.mxu1 %vm76_vm0, %v66_v8  ;;  %v4520_v26 = vld [vmem:[%s5163_s2 + $0xb8] sm:$0xff]  ;;  %v4543_v29 = vld [vmem:[%s5163_s2 + $0x88] sm:$0xff]  ;;  %v4557_v31 = vld [vmem:[%s5163_s2 + $0x80] sm:$0xff] }
  0x19   :  { %3713 = vmatmul.mubr.msk.f32.gmra.mxu0 %vm76_vm0, %v67_v9  ;;  %3729 = vmatmul.mubr.msk.f32.gmra.mxu1 %vm76_vm0, %v67_v9  ;;  %v4548_v30 = vld [vmem:[%s5163_s2 + $0xa8] sm:$0xff]  ;;  %v4564_v32 = vld [vmem:[%s5163_s2 + $0xa0] sm:$0xff] }
  0x1a   :  { %3715 = vmatprep.mubr.msk.f32.mxu0 %vm76_vm0, %v68_v10  ;;  %3731 = vmatprep.mubr.msk.f32.mxu1 %vm76_vm0, %v68_v10  ;;  %v58_v37 = vld [vmem:[%s5163_s2 + $0xc0] sm:$0xff] }
  0x1b   :  { %3739 = vmatprep.subr.mxu0 %v38_v11  ;;  %3755 = vmatprep.subr.mxu1 %v40_v12  ;;  %v4607_v38 = vrot.slane %v58_v37, %v5167_v35  ;;  %v4609_v39 = vrot.slane %v58_v37, %v208_v36 }
  0x1c   :  { %3740 = vmatpush3.msra.mxu0 %v38_v11  ;;  %3756 = vmatpush3.msra.mxu1 %v40_v12 }
  0x1d   :  { %3716 = vmatmul.mubr.msk.f32.gmra.mxu0 %vm76_vm0, %v69_v13  ;;  %3732 = vmatmul.mubr.msk.f32.gmra.mxu1 %vm76_vm0, %v69_v13 }
  0x1e   :  { %3718 = vmatprep.mubr.msk.f32.mxu0 %vm76_vm0, %v70_v14  ;;  %3734 = vmatprep.mubr.msk.f32.mxu1 %vm76_vm0, %v70_v14 }
  0x1f   :  { %3769 = vmatprep.subr.mxu0 %v5168_v16  ;;  %3780 = vmatprep.subr.mxu1 %v5168_v16 }
  0x21   :  { %3719 = vmatmul.mubr.msk.f32.gmra.mxu0 %vm76_vm0, %v71_v15  ;;  %3735 = vmatmul.mubr.msk.f32.gmra.mxu1 %vm76_vm0, %v71_v15 }
  0x22   :  { %3741 = vmatprep.mubr.msk.f32.mxu0 %vm76_vm0, %v64_v4  ;;  %3757 = vmatprep.mubr.msk.f32.mxu1 %vm76_vm0, %v64_v4  ;;  %v318_v4 = vrot.slane %v58_v37, %v317_v58 }
  0x25   :  { %3742 = vmatmul.mubr.msk.f32.vlgmr.msra.gmra.mxu0 %vm76_vm0, %v65_v5  ;;  %3758 = vmatmul.mubr.msk.f32.vlgmr.msra.gmra.mxu1 %vm76_vm0, %v65_v5  ;;  %v427_v5 = vrot.slane %v58_v37, %v426_v59 }
  0x26   :  { %3770 = vmatpush3.msra.mxu0 %v4443_v17  ;;  %3781 = vmatpush3.msra.mxu1 %v4448_v18 }
  0x27   :  { %3744 = vmatprep.mubr.msk.f32.mxu0 %vm76_vm0, %v66_v8  ;;  %3760 = vmatprep.mubr.msk.f32.mxu1 %vm76_vm0, %v66_v8 }
  0x28   :  { %3771 = vmatprep.subr.mxu0 %v5168_v16  ;;  %3782 = vmatprep.subr.mxu1 %v5168_v16 }
  0x29   :  { %3745 = vmatmul.mubr.msk.f32.gmra.mxu0 %vm76_vm0, %v67_v9  ;;  %3761 = vmatmul.mubr.msk.f32.gmra.mxu1 %vm76_vm0, %v67_v9 }
  0x2a   :  { %3772 = vmatpush3.msra.mxu0 %v4459_v19  ;;  %3783 = vmatpush3.msra.mxu1 %v4464_v20 }
  0x2b   :  { %3747 = vmatprep.mubr.msk.f32.mxu0 %vm76_vm0, %v68_v10  ;;  %3763 = vmatprep.mubr.msk.f32.mxu1 %vm76_vm0, %v68_v10 }
  0x2c   :  { %3773 = vmatprep.subr.mxu0 %v5168_v16  ;;  %3784 = vmatprep.subr.mxu1 %v5168_v16 }
  0x2d   :  { %3748 = vmatmul.mubr.msk.f32.gmra.mxu0 %vm76_vm0, %v69_v13  ;;  %3764 = vmatmul.mubr.msk.f32.gmra.mxu1 %vm76_vm0, %v69_v13 }
  0x2e   :  { %3774 = vmatpush3.msra.mxu0 %v4477_v21  ;;  %3785 = vmatpush3.msra.mxu1 %v4482_v22 }
  0x2f   :  { %3750 = vmatprep.mubr.msk.f32.mxu0 %vm76_vm0, %v70_v14  ;;  %3766 = vmatprep.mubr.msk.f32.mxu1 %vm76_vm0, %v70_v14 }
  0x30   :  { %3775 = vmatprep.subr.mxu0 %v5168_v16  ;;  %3786 = vmatprep.subr.mxu1 %v5168_v16 }
  0x31   :  { %3751 = vmatmul.mubr.msk.f32.gmra.mxu0 %vm76_vm0, %v71_v15  ;;  %3767 = vmatmul.mubr.msk.f32.gmra.mxu1 %vm76_vm0, %v71_v15 }
  0x32   :  { %3776 = vmatpush3.msra.mxu0 %v4495_v23  ;;  %3787 = vmatpush3.msra.mxu1 %v4500_v24 }
  0x33   :  { %3777 = vmatprep.mubr.msk.f32.mxu0 %vm4337_vm1, %v5168_v16  ;;  %3788 = vmatprep.mubr.msk.f32.mxu1 %vm4337_vm1, %v5168_v16 }
  0x34   :  { %3791 = vmatprep.subr.mxu0 %v5168_v16  ;;  %3802 = vmatprep.subr.mxu1 %v5168_v16 }
  0x35   :  { %3778 = vmatmul.mubr.f32.vlgmr.msra.gmra.mxu0 %v5168_v16  ;;  %3789 = vmatmul.mubr.f32.vlgmr.msra.gmra.mxu1 %v5168_v16 }
  0x36   :  { %3792 = vmatpush3.msra.mxu0 %v4515_v25  ;;  %3803 = vmatpush3.msra.mxu1 %v4520_v26 }
  0x37   :  { %3793 = vmatprep.subr.mxu0 %v5168_v16  ;;  %3804 = vmatprep.subr.mxu1 %v5168_v16 }
  0x38   :  { %3794 = vmatpush3.msra.mxu0 %v4529_v27  ;;  %3805 = vmatpush3.msra.mxu1 %v4534_v28 }
  0x39   :  { %3795 = vmatprep.subr.mxu0 %v5168_v16  ;;  %3806 = vmatprep.subr.mxu1 %v5168_v16 }
  0x3a   :  { %3796 = vmatpush3.msra.mxu0 %v4543_v29  ;;  %3807 = vmatpush3.msra.mxu1 %v4548_v30 }
  0x3b   :  { %3797 = vmatprep.subr.mxu0 %v5168_v16  ;;  %3808 = vmatprep.subr.mxu1 %v5168_v16 }
  0x3c   :  { %3798 = vmatpush3.msra.mxu0 %v4557_v31  ;;  %3799 = vmatprep.mubr.msk.f32.mxu0 %vm4337_vm1, %v5168_v16 }
  0x3d   :  { %3809 = vmatpush3.msra.mxu1 %v4564_v32  ;;  %3810 = vmatprep.mubr.msk.f32.mxu1 %vm4337_vm1, %v5168_v16 }
  0x3e   :  { %3800 = vmatmul.mubr.f32.vlgmr.msra.gmra.mxu0 %v5168_v16  ;;  %3811 = vmatmul.mubr.f32.vlgmr.msra.gmra.mxu1 %v5168_v16 }
  0x3f   :  { %3813 = vmatprep.subr.mxu0 %v5168_v16  ;;  %3824 = vmatprep.subr.mxu1 %v5168_v16 }
  0x40   :  { %3814 = vmatpush3.msra.mxu0 %v4443_v17  ;;  %3825 = vmatpush3.msra.mxu1 %v4448_v18 }
  0x41   :  { %3815 = vmatprep.subr.mxu0 %v5168_v16  ;;  %3826 = vmatprep.subr.mxu1 %v5168_v16 }
  0x42   :  { %3816 = vmatpush3.msra.mxu0 %v4459_v19  ;;  %3827 = vmatpush3.msra.mxu1 %v4464_v20 }
  0x43   :  { %3817 = vmatprep.subr.mxu0 %v5168_v16  ;;  %3828 = vmatprep.subr.mxu1 %v5168_v16 }
  0x44   :  { %3818 = vmatpush3.msra.mxu0 %v4477_v21  ;;  %3829 = vmatpush3.msra.mxu1 %v4482_v22 }
  0x45   :  { %3819 = vmatprep.subr.mxu0 %v5168_v16  ;;  %3830 = vmatprep.subr.mxu1 %v5168_v16 }
  0x46   :  { %3820 = vmatpush3.msra.mxu0 %v4495_v23  ;;  %3831 = vmatpush3.msra.mxu1 %v4500_v24 }
  0x47   :  { %3821 = vmatprep.mubr.msk.f32.mxu0 %vm4337_vm1, %v5168_v16  ;;  %3832 = vmatprep.mubr.msk.f32.mxu1 %vm4337_vm1, %v5168_v16 }
  0x48   :  { %3835 = vmatprep.subr.mxu0 %v5168_v16  ;;  %3846 = vmatprep.subr.mxu1 %v5168_v16 }
  0xd5   :  { %v3711_v40 = vpop.f32.mrf.mxu0  ;;  %v3727_v41 = vpop.f32.mrf.mxu1 }
  0xd6   :  { %v4612_v42 = vadd.f32 %v3711_v40, %v4607_v38  ;;  %v4615_v43 = vadd.f32 %v3727_v41, %v4609_v39 }
  0xd7   :  { %v167_v44 = vpop.f32.mrf.mxu0  ;;  %v276_v45 = vpop.f32.mrf.mxu1 }
  0xd9   :  { %v3714_v46 = vpop.f32.mrf.mxu0  ;;  %v3730_v47 = vpop.f32.mrf.mxu1 }
  0xda   :  { %v4618_v48 = vadd.f32 %v3714_v46, %v4607_v38  ;;  %v4621_v49 = vadd.f32 %v3730_v47, %v4609_v39 }
  0xdb   :  { %v177_v50 = vpop.f32.mrf.mxu0  ;;  %v286_v51 = vpop.f32.mrf.mxu1 }
  0xdc   :  { %v4624_v52 = vadd.f32 %v177_v50, %v4607_v38  ;;  %v4627_v53 = vadd.f32 %v286_v51, %v4609_v39 }
  0xdd   :  { %v3717_v54 = vpop.f32.mrf.mxu0  ;;  %v3733_v55 = vpop.f32.mrf.mxu1 }
  0xde   :  { %v4630_v56 = vadd.f32 %v3717_v54, %v4607_v38  ;;  %v4633_v57 = vadd.f32 %v3733_v55, %v4609_v39 }
  0xdf   :  { %v187_v60 = vpop.f32.mrf.mxu0  ;;  %v296_v61 = vpop.f32.mrf.mxu1 }
  0xe0   :  { %v4638_v62 = vadd.f32 %v187_v60, %v4607_v38  ;;  %v4641_v63 = vadd.f32 %v296_v61, %v4609_v39 }
  0xe1   :  { %v3720_v0 = vpop.f32.mrf.mxu0  ;;  %v3736_v1 = vpop.f32.mrf.mxu1 }
  0xe2   :  { %v4644_v2 = vadd.f32 %v3720_v0, %v4607_v38  ;;  %v4647_v3 = vadd.f32 %v3736_v1, %v4609_v39 }
  0xe3   :  { %v197_v6 = vpop.f32.mrf.mxu0  ;;  %v306_v7 = vpop.f32.mrf.mxu1 }
  0xe4   :  { %5172 = vst [vmem:[#allocation9_spill] sm:$0xff] %v4644_v2  ;;  %5173 = vst [vmem:[#allocation10_spill] sm:$0xff] %v4647_v3  ;;  %v4650_v8 = vadd.f32 %v197_v6, %v4607_v38  ;;  %v4653_v9 = vadd.f32 %v306_v7, %v4609_v39 }
  0xe5   :  { %v3743_v10 = vpop.f32.mrf.mxu0  ;;  %v3759_v11 = vpop.f32.mrf.mxu1 }
  0xe6   :  { %v4655_v12 = vadd.f32 %v3743_v10, %v318_v4  ;;  %v4657_v13 = vadd.f32 %v3759_v11, %v427_v5 }
  0xe7   :  { %v385_v14 = vpop.f32.mrf.mxu0  ;;  %v494_v15 = vpop.f32.mrf.mxu1 }
  0xe9   :  { %v3746_v33 = vpop.f32.mrf.mxu0  ;;  %v3762_v36 = vpop.f32.mrf.mxu1 }
  0xea   :  { %v4659_v40 = vadd.f32 %v3746_v33, %v318_v4  ;;  %v4661_v37 = vadd.f32 %v3762_v36, %v427_v5  ;;  %v168_v36 = vadd.f32 %v167_v44, %v4607_v38 }
  0xeb   :  { %v395_v41 = vpop.f32.mrf.mxu0  ;;  %v504_v46 = vpop.f32.mrf.mxu1 }
  0xec   :  { %v4663_v47 = vadd.f32 %v395_v41, %v318_v4  ;;  %v4665_v50 = vadd.f32 %v504_v46, %v427_v5  ;;  %v277_v41 = vadd.f32 %v276_v45, %v4609_v39  ;;  %v386_v45 = vadd.f32 %v385_v14, %v318_v4 }
  0xed   :  { %v3749_v51 = vpop.f32.mrf.mxu0  ;;  %v3765_v54 = vpop.f32.mrf.mxu1 }
  0xee   :  { %v4667_v55 = vadd.f32 %v3749_v51, %v318_v4  ;;  %v4669_v58 = vadd.f32 %v3765_v54, %v427_v5 }
  0xef   :  { %v405_v59 = vpop.f32.mrf.mxu0  ;;  %v514_v60 = vpop.f32.mrf.mxu1 }
  0xf0   :  { %v4671_v61 = vadd.f32 %v405_v59, %v318_v4  ;;  %v4673_v0 = vadd.f32 %v514_v60, %v427_v5 }
  0xf1   :  { %v3752_v1 = vpop.f32.mrf.mxu0  ;;  %v3768_v6 = vpop.f32.mrf.mxu1 }
  0xf2   :  { %v4675_v7 = vadd.f32 %v3752_v1, %v318_v4  ;;  %v4677_v10 = vadd.f32 %v3768_v6, %v427_v5  ;;  %v495_v6 = vadd.f32 %v494_v15, %v427_v5 }
  0xf3   :  { %v415_v11 = vpop.f32.mrf.mxu0  ;;  %v524_v33 = vpop.f32.mrf.mxu1 }
  0xf4   :  { %5174 = vst [vmem:[#allocation11_spill] sm:$0xff] %v4675_v7  ;;  %5175 = vst [vmem:[#allocation12_spill] sm:$0xff] %v4677_v10  ;;  %v4681_v46 = vadd.f32 %v415_v11, %v318_v4  ;;  %v4683_v51 = vadd.f32 %v524_v33, %v427_v5 }
  0xf5   :  { %v603_v54 = vpop.f32.mrf.mxu0  ;;  %v674_v59 = vpop.f32.mrf.mxu1 }
  0xf6   :  { %5176 = vst [vmem:[#allocation13_spill] sm:$0xff] %v4681_v46  ;;  %5177 = vst [vmem:[#allocation14_spill] sm:$0xff] %v4683_v51  ;;  %v607_v60 = vadd.f32 %v603_v54, %v168_v36  ;;  %v678_v35 = vadd.f32 %v674_v59, %v277_v41 }
  0xf7   :  { %v3779_v16 = vpop.f32.mrf.mxu0  ;;  %v3790_v34 = vpop.f32.mrf.mxu1 }
  0xf8   :  { %v3428_v1 = vmul.f32 -1.442695, %v607_v60  ;;  %v3429_v7 = vmul.f32 -1.442695, %v678_v35 }
  0xfa   :  { %4151 = vpow2.f32 %v3428_v1 }
  0xfb   :  { %4153 = vpow2.f32 %v3429_v7 }
  0xfe   :  { %v745_v10 = vpop.f32.mrf.mxu0  ;;  %v816_v3 = vpop.f32.mrf.mxu1 }
  0xff   :  { %v820_v38 = vadd.f32 %v816_v3, %v495_v6  ;;  %v749_v33 = vadd.f32 %v745_v10, %v386_v45  ;;  %v5178_v10 = vmov 0.0  }
 0x100   :  { %v3801_v44 = vpop.f32.mrf.mxu0  ;;  %v3812_v39 = vpop.f32.mrf.mxu1 }
 0x101   :  { %v3430_v11 = vmul.f32 -1.442695, %v820_v38 }
 0x103   :  { %4155 = vpow2.f32 %v3430_v11 }
 0x104   :  { %4157 = vtanh.f32 %v749_v33 }
 0x107   :  { %v4152_v2 = vpop.eup %4151 }
 0x108   :  { %v4154_v46 = vpop.eup %4153  ;;  %v824_v51 = vadd.f32 1.0, %v4152_v2 }
 0x109   :  { %v830_v36 = vadd.f32 1.0, %v4154_v46 }
 0x10a   :  { %4159 = vrcp.f32 %v824_v51 }
 0x10b   :  { %4161 = vrcp.f32 %v830_v36 }
 0x110   :  { %v4156_v16 = vpop.eup %4155 }
 0x111   :  { %v4158_v34 = vpop.eup %4157  ;;  %v837_v7 = vadd.f32 1.0, %v4156_v16 }
 0x113   :  { %4163 = vrcp.f32 %v837_v7 }
 0x117   :  { %v4160_v35 = vpop.eup %4159 }
 0x118   :  { %v4162_v5 = vpop.eup %4161  ;;  %v841_v15 = vmul.f32 %v4160_v35, %v4158_v34 }
 0x119   :  { %v840_v3 = vmul.f32 0.0, %v4162_v5 }
 0x11b   :  { %v4685_v41 = vadd.f32 %v841_v15, %v840_v3 }
 0x11d   :  { %4165 = vtanh.f32 %v4685_v41 }
 0x120   :  { %v4164_v4 = vpop.eup %4163 }
 0x12a   :  { %v4166_v14 = vpop.eup %4165 }
 0x12b   :  { %v844_v2 = vmul.f32 %v4166_v14, %v4164_v4 }
 0x12d   :  { %3822 = vmatmul.mubr.msk.f32.vlgmr.msra.gmra.mxu0 %vm533_vm2, %v844_v2  ;;  %3833 = vmatmul.mubr.msk.f32.vlgmr.msra.gmra.mxu1 %vm533_vm2, %v844_v2 }
 0x12e   :  { %3836 = vmatpush3.msra.mxu0 %v4515_v25  ;;  %3847 = vmatpush3.msra.mxu1 %v4520_v26 }
 0x12f   :  { %3837 = vmatprep.subr.mxu0 %v5178_v10  ;;  %3848 = vmatprep.subr.mxu1 %v5178_v10 }
 0x130   :  { %3838 = vmatpush3.msra.mxu0 %v4529_v27  ;;  %3849 = vmatpush3.msra.mxu1 %v4534_v28 }
 0x131   :  { %3839 = vmatprep.subr.mxu0 %v5178_v10  ;;  %3850 = vmatprep.subr.mxu1 %v5178_v10 }
 0x132   :  { %3840 = vmatpush3.msra.mxu0 %v4543_v29  ;;  %3851 = vmatpush3.msra.mxu1 %v4548_v30 }
 0x133   :  { %3841 = vmatprep.subr.mxu0 %v5178_v10  ;;  %3852 = vmatprep.subr.mxu1 %v5178_v10 }
 0x134   :  { %3842 = vmatpush3.msra.mxu0 %v4557_v31  ;;  %3843 = vmatprep.mubr.msk.f32.mxu0 %vm4337_vm1, %v5178_v10 }
 0x135   :  { %3853 = vmatpush3.msra.mxu1 %v4564_v32  ;;  %3854 = vmatprep.mubr.msk.f32.mxu1 %vm4337_vm1, %v5178_v10 }
 0x136   :  { %3844 = vmatmul.mubr.msk.f32.vlgmr.msra.gmra.mxu0 %vm533_vm2, %v844_v2  ;;  %3855 = vmatmul.mubr.msk.f32.vlgmr.msra.gmra.mxu1 %vm533_vm2, %v844_v2 }
 0x137   :  { %3857 = vmatprep.subr.mxu0 %v5178_v10  ;;  %3868 = vmatprep.subr.mxu1 %v5178_v10 }
 0x138   :  { %3858 = vmatpush3.msra.mxu0 %v4443_v17  ;;  %3869 = vmatpush3.msra.mxu1 %v4448_v18 }
 0x139   :  { %3859 = vmatprep.subr.mxu0 %v5178_v10  ;;  %3870 = vmatprep.subr.mxu1 %v5178_v10 }
 0x13a   :  { %3860 = vmatpush3.msra.mxu0 %v4459_v19  ;;  %3871 = vmatpush3.msra.mxu1 %v4464_v20 }
 0x13b   :  { %3861 = vmatprep.subr.mxu0 %v5178_v10  ;;  %3872 = vmatprep.subr.mxu1 %v5178_v10 }
 0x13c   :  { %3862 = vmatpush3.msra.mxu0 %v4477_v21  ;;  %3873 = vmatpush3.msra.mxu1 %v4482_v22 }
 0x13d   :  { %3863 = vmatprep.subr.mxu0 %v5178_v10  ;;  %3874 = vmatprep.subr.mxu1 %v5178_v10 }
 0x13e   :  { %3864 = vmatpush3.msra.mxu0 %v4495_v23  ;;  %3875 = vmatpush3.msra.mxu1 %v4500_v24 }
 0x13f   :  { %3865 = vmatprep.mubr.msk.f32.mxu0 %vm4337_vm1, %v5178_v10  ;;  %3876 = vmatprep.mubr.msk.f32.mxu1 %vm4337_vm1, %v5178_v10 }
 0x140   :  { %3879 = vmatprep.subr.mxu0 %v5178_v10  ;;  %3890 = vmatprep.subr.mxu1 %v5178_v10 }
 0x1ed   :  { %v914_v46 = vpop.f32.mrf.mxu0  ;;  %v985_v51 = vpop.f32.mrf.mxu1 }
 0x1ee   :  { %v918_v54 = vadd.f32 %v914_v46, %v4612_v42  ;;  %v989_v59 = vadd.f32 %v985_v51, %v4615_v43 }
 0x1ef   :  { %v3823_v60 = vpop.f32.mrf.mxu0  ;;  %v3834_v1 = vpop.f32.mrf.mxu1 }
 0x1f0   :  { %v3435_v6 = vmul.f32 -1.442695, %v918_v54  ;;  %v3436_v38 = vmul.f32 -1.442695, %v989_v59 }
 0x1f2   :  { %4167 = vpow2.f32 %v3435_v6 }
 0x1f3   :  { %4169 = vpow2.f32 %v3436_v38 }
 0x1f6   :  { %v1056_v44 = vpop.f32.mrf.mxu0  ;;  %v1127_v39 = vpop.f32.mrf.mxu1 }
 0x1f7   :  { %v1131_v45 = vadd.f32 %v1127_v39, %v4657_v13  ;;  %v1060_v16 = vadd.f32 %v1056_v44, %v4655_v12 }
 0x1f8   :  { %v3845_v11 = vpop.f32.mrf.mxu0  ;;  %v3856_v33 = vpop.f32.mrf.mxu1 }
 0x1f9   :  { %v3437_v36 = vmul.f32 -1.442695, %v1131_v45 }
 0x1fb   :  { %4171 = vpow2.f32 %v3437_v36 }
 0x1fc   :  { %4173 = vtanh.f32 %v1060_v16 }
 0x1ff   :  { %v4168_v34 = vpop.eup %4167 }
 0x200   :  { %v4170_v35 = vpop.eup %4169  ;;  %v1135_v42 = vadd.f32 1.0, %v4168_v34 }
 0x201   :  { %v1141_v43 = vadd.f32 1.0, %v4170_v35 }
 0x202   :  { %4175 = vrcp.f32 %v1135_v42 }
 0x203   :  { %4177 = vrcp.f32 %v1141_v43 }
 0x208   :  { %v4172_v5 = vpop.eup %4171 }
 0x209   :  { %v4174_v15 = vpop.eup %4173  ;;  %v1148_v14 = vadd.f32 1.0, %v4172_v5 }
 0x20b   :  { %4179 = vrcp.f32 %v1148_v14 }
 0x20f   :  { %v4176_v7 = vpop.eup %4175 }
 0x210   :  { %v4178_v3 = vpop.eup %4177  ;;  %v1152_v4 = vmul.f32 %v4176_v7, %v4174_v15 }
 0x211   :  { %v1151_v13 = vmul.f32 %v4178_v3, %v4685_v41 }
 0x213   :  { %v4737_v2 = vadd.f32 %v1152_v4, %v1151_v13 }
 0x215   :  { %4181 = vtanh.f32 %v4737_v2 }
 0x218   :  { %v4180_v12 = vpop.eup %4179 }
 0x222   :  { %v4182_v46 = vpop.eup %4181 }
 0x223   :  { %v1155_v51 = vmul.f32 %v4182_v46, %v4180_v12 }
 0x225   :  { %3866 = vmatmul.mubr.msk.f32.vlgmr.msra.gmra.mxu0 %vm533_vm2, %v1155_v51  ;;  %3877 = vmatmul.mubr.msk.f32.vlgmr.msra.gmra.mxu1 %vm533_vm2, %v1155_v51 }
 0x226   :  { %3880 = vmatpush3.msra.mxu0 %v4515_v25  ;;  %3891 = vmatpush3.msra.mxu1 %v4520_v26 }
 0x227   :  { %3881 = vmatprep.subr.mxu0 %v5178_v10  ;;  %3892 = vmatprep.subr.mxu1 %v5178_v10 }
 0x228   :  { %3882 = vmatpush3.msra.mxu0 %v4529_v27  ;;  %3893 = vmatpush3.msra.mxu1 %v4534_v28 }
 0x229   :  { %3883 = vmatprep.subr.mxu0 %v5178_v10  ;;  %3894 = vmatprep.subr.mxu1 %v5178_v10 }
 0x22a   :  { %3884 = vmatpush3.msra.mxu0 %v4543_v29  ;;  %3895 = vmatpush3.msra.mxu1 %v4548_v30 }
 0x22b   :  { %3885 = vmatprep.subr.mxu0 %v5178_v10  ;;  %3896 = vmatprep.subr.mxu1 %v5178_v10 }
 0x22c   :  { %3886 = vmatpush3.msra.mxu0 %v4557_v31  ;;  %3887 = vmatprep.mubr.msk.f32.mxu0 %vm4337_vm1, %v5178_v10 }
 0x22d   :  { %3897 = vmatpush3.msra.mxu1 %v4564_v32  ;;  %3898 = vmatprep.mubr.msk.f32.mxu1 %vm4337_vm1, %v5178_v10 }
 0x22e   :  { %3888 = vmatmul.mubr.msk.f32.vlgmr.msra.gmra.mxu0 %vm533_vm2, %v1155_v51  ;;  %3899 = vmatmul.mubr.msk.f32.vlgmr.msra.gmra.mxu1 %vm533_vm2, %v1155_v51 }
 0x22f   :  { %3901 = vmatprep.subr.mxu0 %v5178_v10  ;;  %3912 = vmatprep.subr.mxu1 %v5178_v10 }
 0x230   :  { %3902 = vmatpush3.msra.mxu0 %v4443_v17  ;;  %3913 = vmatpush3.msra.mxu1 %v4448_v18 }
 0x231   :  { %3903 = vmatprep.subr.mxu0 %v5178_v10  ;;  %3914 = vmatprep.subr.mxu1 %v5178_v10 }
 0x232   :  { %3904 = vmatpush3.msra.mxu0 %v4459_v19  ;;  %3915 = vmatpush3.msra.mxu1 %v4464_v20 }
 0x233   :  { %3905 = vmatprep.subr.mxu0 %v5178_v10  ;;  %3916 = vmatprep.subr.mxu1 %v5178_v10 }
 0x234   :  { %3906 = vmatpush3.msra.mxu0 %v4477_v21  ;;  %3917 = vmatpush3.msra.mxu1 %v4482_v22 }
 0x235   :  { %3907 = vmatprep.subr.mxu0 %v5178_v10  ;;  %3918 = vmatprep.subr.mxu1 %v5178_v10 }
 0x236   :  { %3908 = vmatpush3.msra.mxu0 %v4495_v23  ;;  %3919 = vmatpush3.msra.mxu1 %v4500_v24 }
 0x237   :  { %3909 = vmatprep.mubr.msk.f32.mxu0 %vm4337_vm1, %v5178_v10  ;;  %3920 = vmatprep.mubr.msk.f32.mxu1 %vm4337_vm1, %v5178_v10 }
 0x238   :  { %3923 = vmatprep.subr.mxu0 %v5178_v10  ;;  %3934 = vmatprep.subr.mxu1 %v5178_v10 }
 0x2e5   :  { %v1225_v41 = vpop.f32.mrf.mxu0  ;;  %v1296_v54 = vpop.f32.mrf.mxu1 }
 0x2e6   :  { %v1229_v59 = vadd.f32 %v1225_v41, %v4624_v52  ;;  %v1300_v60 = vadd.f32 %v1296_v54, %v4627_v53 }
 0x2e7   :  { %v3867_v1 = vpop.f32.mrf.mxu0  ;;  %v3878_v6 = vpop.f32.mrf.mxu1 }
 0x2e8   :  { %v3442_v38 = vmul.f32 -1.442695, %v1229_v59  ;;  %v3443_v44 = vmul.f32 -1.442695, %v1300_v60 }
 0x2ea   :  { %4183 = vpow2.f32 %v3442_v38 }
 0x2eb   :  { %4185 = vpow2.f32 %v3443_v44 }
 0x2ee   :  { %v1367_v39 = vpop.f32.mrf.mxu0  ;;  %v1438_v45 = vpop.f32.mrf.mxu1 }
 0x2ef   :  { %v1442_v11 = vadd.f32 %v1438_v45, %v4665_v50  ;;  %v1371_v34 = vadd.f32 %v1367_v39, %v4663_v47 }
 0x2f0   :  { %v3889_v33 = vpop.f32.mrf.mxu0  ;;  %v3900_v36 = vpop.f32.mrf.mxu1 }
 0x2f1   :  { %v3444_v16 = vmul.f32 -1.442695, %v1442_v11 }
 0x2f3   :  { %4187 = vpow2.f32 %v3444_v16 }
 0x2f4   :  { %4189 = vtanh.f32 %v1371_v34 }
 0x2f7   :  { %v4184_v35 = vpop.eup %4183 }
 0x2f8   :  { %v4186_v42 = vpop.eup %4185  ;;  %v1446_v52 = vadd.f32 1.0, %v4184_v35 }
 0x2f9   :  { %v1452_v53 = vadd.f32 1.0, %v4186_v42 }
 0x2fa   :  { %4191 = vrcp.f32 %v1446_v52 }
 0x2fb   :  { %4193 = vrcp.f32 %v1452_v53 }
 0x300   :  { %v4188_v43 = vpop.eup %4187 }
 0x301   :  { %v4190_v5 = vpop.eup %4189  ;;  %v1459_v4 = vadd.f32 1.0, %v4188_v43 }
 0x303   :  { %4195 = vrcp.f32 %v1459_v4 }
 0x307   :  { %v4192_v15 = vpop.eup %4191 }
 0x308   :  { %v4194_v7 = vpop.eup %4193  ;;  %v1463_v3 = vmul.f32 %v4192_v15, %v4190_v5 }
 0x309   :  { %v1462_v50 = vmul.f32 %v4194_v7, %v4737_v2 }
 0x30b   :  { %v4789_v14 = vadd.f32 %v1463_v3, %v1462_v50 }
 0x30d   :  { %4197 = vtanh.f32 %v4789_v14 }
 0x310   :  { %v4196_v47 = vpop.eup %4195 }
 0x31a   :  { %v4198_v13 = vpop.eup %4197 }
 0x31b   :  { %v1466_v12 = vmul.f32 %v4198_v13, %v4196_v47 }
 0x31d   :  { %3910 = vmatmul.mubr.msk.f32.vlgmr.msra.gmra.mxu0 %vm533_vm2, %v1466_v12  ;;  %3921 = vmatmul.mubr.msk.f32.vlgmr.msra.gmra.mxu1 %vm533_vm2, %v1466_v12 }
 0x31e   :  { %3924 = vmatpush3.msra.mxu0 %v4515_v25  ;;  %3935 = vmatpush3.msra.mxu1 %v4520_v26 }
 0x31f   :  { %3925 = vmatprep.subr.mxu0 %v5178_v10  ;;  %3936 = vmatprep.subr.mxu1 %v5178_v10 }
 0x320   :  { %3926 = vmatpush3.msra.mxu0 %v4529_v27  ;;  %3937 = vmatpush3.msra.mxu1 %v4534_v28 }
 0x321   :  { %3927 = vmatprep.subr.mxu0 %v5178_v10  ;;  %3938 = vmatprep.subr.mxu1 %v5178_v10 }
 0x322   :  { %3928 = vmatpush3.msra.mxu0 %v4543_v29  ;;  %3939 = vmatpush3.msra.mxu1 %v4548_v30 }
 0x323   :  { %3929 = vmatprep.subr.mxu0 %v5178_v10  ;;  %3940 = vmatprep.subr.mxu1 %v5178_v10 }
 0x324   :  { %3930 = vmatpush3.msra.mxu0 %v4557_v31  ;;  %3931 = vmatprep.mubr.msk.f32.mxu0 %vm4337_vm1, %v5178_v10 }
 0x325   :  { %3941 = vmatpush3.msra.mxu1 %v4564_v32  ;;  %3942 = vmatprep.mubr.msk.f32.mxu1 %vm4337_vm1, %v5178_v10 }
 0x326   :  { %3932 = vmatmul.mubr.msk.f32.vlgmr.msra.gmra.mxu0 %vm533_vm2, %v1466_v12  ;;  %3943 = vmatmul.mubr.msk.f32.vlgmr.msra.gmra.mxu1 %vm533_vm2, %v1466_v12 }
 0x327   :  { %3945 = vmatprep.subr.mxu0 %v5178_v10  ;;  %3956 = vmatprep.subr.mxu1 %v5178_v10 }
 0x328   :  { %3946 = vmatpush3.msra.mxu0 %v4443_v17  ;;  %3957 = vmatpush3.msra.mxu1 %v4448_v18 }
 0x329   :  { %3947 = vmatprep.subr.mxu0 %v5178_v10  ;;  %3958 = vmatprep.subr.mxu1 %v5178_v10 }
 0x32a   :  { %3948 = vmatpush3.msra.mxu0 %v4459_v19  ;;  %3959 = vmatpush3.msra.mxu1 %v4464_v20 }
 0x32b   :  { %3949 = vmatprep.subr.mxu0 %v5178_v10  ;;  %3960 = vmatprep.subr.mxu1 %v5178_v10 }
 0x32c   :  { %3950 = vmatpush3.msra.mxu0 %v4477_v21  ;;  %3961 = vmatpush3.msra.mxu1 %v4482_v22 }
 0x32d   :  { %3951 = vmatprep.subr.mxu0 %v5178_v10  ;;  %3962 = vmatprep.subr.mxu1 %v5178_v10 }
 0x32e   :  { %3952 = vmatpush3.msra.mxu0 %v4495_v23  ;;  %3963 = vmatpush3.msra.mxu1 %v4500_v24 }
 0x32f   :  { %3953 = vmatprep.mubr.msk.f32.mxu0 %vm4337_vm1, %v5178_v10  ;;  %3964 = vmatprep.mubr.msk.f32.mxu1 %vm4337_vm1, %v5178_v10 }
 0x330   :  { %3967 = vmatprep.subr.mxu0 %v5178_v10  ;;  %3978 = vmatprep.subr.mxu1 %v5178_v10 }
 0x3dd   :  { %v1536_v2 = vpop.f32.mrf.mxu0  ;;  %v1607_v46 = vpop.f32.mrf.mxu1 }
 0x3de   :  { %v1540_v51 = vadd.f32 %v1536_v2, %v4618_v48  ;;  %v1611_v41 = vadd.f32 %v1607_v46, %v4621_v49 }
 0x3df   :  { %v3911_v54 = vpop.f32.mrf.mxu0  ;;  %v3922_v59 = vpop.f32.mrf.mxu1 }
 0x3e0   :  { %v3449_v60 = vmul.f32 -1.442695, %v1540_v51  ;;  %v3450_v1 = vmul.f32 -1.442695, %v1611_v41 }
 0x3e2   :  { %4199 = vpow2.f32 %v3449_v60 }
 0x3e3   :  { %4201 = vpow2.f32 %v3450_v1 }
 0x3e6   :  { %v1678_v6 = vpop.f32.mrf.mxu0  ;;  %v1749_v38 = vpop.f32.mrf.mxu1 }
 0x3e7   :  { %v1753_v44 = vadd.f32 %v1749_v38, %v4661_v37  ;;  %v1682_v33 = vadd.f32 %v1678_v6, %v4659_v40 }
 0x3e8   :  { %v3933_v39 = vpop.f32.mrf.mxu0  ;;  %v3944_v45 = vpop.f32.mrf.mxu1 }
 0x3e9   :  { %v3451_v11 = vmul.f32 -1.442695, %v1753_v44 }
 0x3eb   :  { %4203 = vpow2.f32 %v3451_v11 }
 0x3ec   :  { %4205 = vtanh.f32 %v1682_v33 }
 0x3ef   :  { %v4200_v36 = vpop.eup %4199 }
 0x3f0   :  { %v4202_v16 = vpop.eup %4201  ;;  %v1757_v48 = vadd.f32 1.0, %v4200_v36 }
 0x3f1   :  { %v1763_v49 = vadd.f32 1.0, %v4202_v16 }
 0x3f2   :  { %4207 = vrcp.f32 %v1757_v48 }
 0x3f3   :  { %4209 = vrcp.f32 %v1763_v49 }
 0x3f8   :  { %v4204_v34 = vpop.eup %4203 }
 0x3f9   :  { %v4206_v35 = vpop.eup %4205  ;;  %v1770_v43 = vadd.f32 1.0, %v4204_v34 }
 0x3fb   :  { %4211 = vrcp.f32 %v1770_v43 }
 0x3ff   :  { %v4208_v42 = vpop.eup %4207 }
 0x400   :  { %v4210_v52 = vpop.eup %4209  ;;  %v1774_v53 = vmul.f32 %v4208_v42, %v4206_v35 }
 0x401   :  { %v1773_v37 = vmul.f32 %v4210_v52, %v4789_v14 }
 0x403   :  { %v4841_v5 = vadd.f32 %v1774_v53, %v1773_v37 }
 0x405   :  { %4213 = vtanh.f32 %v4841_v5 }
 0x408   :  { %v4212_v40 = vpop.eup %4211 }
 0x412   :  { %v4214_v15 = vpop.eup %4213 }
 0x413   :  { %v1777_v7 = vmul.f32 %v4214_v15, %v4212_v40 }
 0x415   :  { %3954 = vmatmul.mubr.msk.f32.vlgmr.msra.gmra.mxu0 %vm533_vm2, %v1777_v7  ;;  %3965 = vmatmul.mubr.msk.f32.vlgmr.msra.gmra.mxu1 %vm533_vm2, %v1777_v7 }
 0x416   :  { %3968 = vmatpush3.msra.mxu0 %v4515_v25  ;;  %3979 = vmatpush3.msra.mxu1 %v4520_v26 }
 0x417   :  { %3969 = vmatprep.subr.mxu0 %v5178_v10  ;;  %3980 = vmatprep.subr.mxu1 %v5178_v10 }
 0x418   :  { %3970 = vmatpush3.msra.mxu0 %v4529_v27  ;;  %3981 = vmatpush3.msra.mxu1 %v4534_v28 }
 0x419   :  { %3971 = vmatprep.subr.mxu0 %v5178_v10  ;;  %3982 = vmatprep.subr.mxu1 %v5178_v10 }
 0x41a   :  { %3972 = vmatpush3.msra.mxu0 %v4543_v29  ;;  %3983 = vmatpush3.msra.mxu1 %v4548_v30 }
 0x41b   :  { %3973 = vmatprep.subr.mxu0 %v5178_v10  ;;  %3984 = vmatprep.subr.mxu1 %v5178_v10 }
 0x41c   :  { %3974 = vmatpush3.msra.mxu0 %v4557_v31  ;;  %3975 = vmatprep.mubr.msk.f32.mxu0 %vm4337_vm1, %v5178_v10 }
 0x41d   :  { %3985 = vmatpush3.msra.mxu1 %v4564_v32  ;;  %3986 = vmatprep.mubr.msk.f32.mxu1 %vm4337_vm1, %v5178_v10 }
 0x41e   :  { %3976 = vmatmul.mubr.msk.f32.vlgmr.msra.gmra.mxu0 %vm533_vm2, %v1777_v7  ;;  %3987 = vmatmul.mubr.msk.f32.vlgmr.msra.gmra.mxu1 %vm533_vm2, %v1777_v7 }
 0x41f   :  { %3989 = vmatprep.subr.mxu0 %v5178_v10  ;;  %4000 = vmatprep.subr.mxu1 %v5178_v10 }
 0x420   :  { %3990 = vmatpush3.msra.mxu0 %v4443_v17  ;;  %4001 = vmatpush3.msra.mxu1 %v4448_v18 }
 0x421   :  { %3991 = vmatprep.subr.mxu0 %v5178_v10  ;;  %4002 = vmatprep.subr.mxu1 %v5178_v10 }
 0x422   :  { %3992 = vmatpush3.msra.mxu0 %v4459_v19  ;;  %4003 = vmatpush3.msra.mxu1 %v4464_v20 }
 0x423   :  { %3993 = vmatprep.subr.mxu0 %v5178_v10  ;;  %4004 = vmatprep.subr.mxu1 %v5178_v10 }
 0x424   :  { %3994 = vmatpush3.msra.mxu0 %v4477_v21  ;;  %4005 = vmatpush3.msra.mxu1 %v4482_v22 }
 0x425   :  { %3995 = vmatprep.subr.mxu0 %v5178_v10  ;;  %4006 = vmatprep.subr.mxu1 %v5178_v10 }
 0x426   :  { %3996 = vmatpush3.msra.mxu0 %v4495_v23  ;;  %4007 = vmatpush3.msra.mxu1 %v4500_v24 }
 0x427   :  { %3997 = vmatprep.mubr.msk.f32.mxu0 %vm4337_vm1, %v5178_v10  ;;  %4008 = vmatprep.mubr.msk.f32.mxu1 %vm4337_vm1, %v5178_v10 }
 0x428   :  { %4011 = vmatprep.subr.mxu0 %v5178_v10  ;;  %4022 = vmatprep.subr.mxu1 %v5178_v10 }
 0x4d5   :  { %v1847_v17 = vpop.f32.mrf.mxu0  ;;  %v1918_v18 = vpop.f32.mrf.mxu1 }
 0x4d6   :  { %v1851_v19 = vadd.f32 %v1847_v17, %v4638_v62  ;;  %v1922_v20 = vadd.f32 %v1918_v18, %v4641_v63 }
 0x4d7   :  { %v3955_v21 = vpop.f32.mrf.mxu0  ;;  %v3966_v22 = vpop.f32.mrf.mxu1 }
 0x4d8   :  { %v3456_v23 = vmul.f32 -1.442695, %v1851_v19  ;;  %v3457_v24 = vmul.f32 -1.442695, %v1922_v20 }
 0x4da   :  { %4215 = vpow2.f32 %v3456_v23 }
 0x4db   :  { %4217 = vpow2.f32 %v3457_v24  ;;  %v4993_v24 = vld [vmem:[%s5163_s2 + $0x98] sm:$0xff] }
 0x4de   :  { %v1989_v3 = vpop.f32.mrf.mxu0  ;;  %v2060_v4 = vpop.f32.mrf.mxu1 }
 0x4df   :  { %v2064_v50 = vadd.f32 %v2060_v4, %v4673_v0  ;;  %v1993_v12 = vadd.f32 %v1989_v3, %v4671_v61  ;;  %v4999_v3 = vld [vmem:[%s5163_s2 + $0xb8] sm:$0xff]  ;;  %v5007_v4 = vld [vmem:[%s5163_s2 + $0x90] sm:$0xff] }
 0x4e0   :  { %v3977_v14 = vpop.f32.mrf.mxu0  ;;  %v3988_v47 = vpop.f32.mrf.mxu1 }
 0x4e1   :  { %v3458_v13 = vmul.f32 -1.442695, %v2064_v50  ;;  %v5013_v50 = vld [vmem:[%s5163_s2 + $0xb0] sm:$0xff]  ;;  %v5021_v14 = vld [vmem:[%s5163_s2 + $0x88] sm:$0xff] }
 0x4e2   :  { %v5027_v47 = vld [vmem:[%s5163_s2 + $0xa8] sm:$0xff] }
 0x4e3   :  { %4219 = vpow2.f32 %v3458_v13  ;;  %v5035_v13 = vld [vmem:[%s5163_s2 + $0x80] sm:$0xff] }
 0x4e4   :  { %4221 = vtanh.f32 %v1993_v12  ;;  %v5043_v12 = vld [vmem:[%s5163_s2 + $0xa0] sm:$0xff] }
 0x4e7   :  { %v4216_v2 = vpop.eup %4215 }
 0x4e8   :  { %v4218_v46 = vpop.eup %4217  ;;  %v2068_v62 = vadd.f32 1.0, %v4216_v2 }
 0x4e9   :  { %v2074_v63 = vadd.f32 1.0, %v4218_v46 }
 0x4ea   :  { %4223 = vrcp.f32 %v2068_v62 }
 0x4eb   :  { %4225 = vrcp.f32 %v2074_v63 }
 0x4f0   :  { %v4220_v51 = vpop.eup %4219 }
 0x4f1   :  { %v4222_v41 = vpop.eup %4221  ;;  %v2081_v1 = vadd.f32 1.0, %v4220_v51 }
 0x4f3   :  { %4227 = vrcp.f32 %v2081_v1 }
 0x4f7   :  { %v4224_v54 = vpop.eup %4223 }
 0x4f8   :  { %v4226_v59 = vpop.eup %4225  ;;  %v2085_v60 = vmul.f32 %v4224_v54, %v4222_v41 }
 0x4f9   :  { %v2084_v0 = vmul.f32 %v4226_v59, %v4841_v5 }
 0x4fb   :  { %v4893_v6 = vadd.f32 %v2085_v60, %v2084_v0  ;;  %v5179_v0 = vld [vmem:[#allocation14_spill] sm:$0xff] }
 0x4fd   :  { %4229 = vtanh.f32 %v4893_v6 }
 0x500   :  { %v4228_v61 = vpop.eup %4227 }
 0x50a   :  { %v4230_v38 = vpop.eup %4229 }
 0x50b   :  { %v2088_v44 = vmul.f32 %v4230_v38, %v4228_v61 }
 0x50d   :  { %3998 = vmatmul.mubr.msk.f32.vlgmr.msra.gmra.mxu0 %vm533_vm2, %v2088_v44  ;;  %4009 = vmatmul.mubr.msk.f32.vlgmr.msra.gmra.mxu1 %vm533_vm2, %v2088_v44 }
 0x50e   :  { %4012 = vmatpush3.msra.mxu0 %v4515_v25  ;;  %4023 = vmatpush3.msra.mxu1 %v4520_v26  ;;  %v4923_v25 = vld [vmem:[%s5163_s2 + $0x58] sm:$0xff] }
 0x50f   :  { %4013 = vmatprep.subr.mxu0 %v5178_v10  ;;  %4024 = vmatprep.subr.mxu1 %v5178_v10  ;;  %v4929_v26 = vld [vmem:[%s5163_s2 + $0x78] sm:$0xff] }
 0x510   :  { %4014 = vmatpush3.msra.mxu0 %v4529_v27  ;;  %4025 = vmatpush3.msra.mxu1 %v4534_v28  ;;  %v4937_v27 = vld [vmem:[%s5163_s2 + $0x50] sm:$0xff] }
 0x511   :  { %4015 = vmatprep.subr.mxu0 %v5178_v10  ;;  %4026 = vmatprep.subr.mxu1 %v5178_v10  ;;  %v4943_v28 = vld [vmem:[%s5163_s2 + $0x70] sm:$0xff] }
 0x512   :  { %4016 = vmatpush3.msra.mxu0 %v4543_v29  ;;  %4027 = vmatpush3.msra.mxu1 %v4548_v30  ;;  %v4951_v29 = vld [vmem:[%s5163_s2 + $0x48] sm:$0xff] }
 0x513   :  { %4017 = vmatprep.subr.mxu0 %v5178_v10  ;;  %4028 = vmatprep.subr.mxu1 %v5178_v10  ;;  %v4957_v30 = vld [vmem:[%s5163_s2 + $0x68] sm:$0xff] }
 0x514   :  { %4018 = vmatpush3.msra.mxu0 %v4557_v31  ;;  %4019 = vmatprep.mubr.msk.f32.mxu0 %vm4337_vm1, %v5178_v10  ;;  %v4965_v31 = vld [vmem:[%s5163_s2 + $0x40] sm:$0xff] }
 0x515   :  { %4029 = vmatpush3.msra.mxu1 %v4564_v32  ;;  %4030 = vmatprep.mubr.msk.f32.mxu1 %vm4337_vm1, %v5178_v10  ;;  %v4971_v32 = vld [vmem:[%s5163_s2 + $0x60] sm:$0xff] }
 0x516   :  { %4020 = vmatmul.mubr.msk.f32.vlgmr.msra.gmra.mxu0 %vm533_vm2, %v2088_v44  ;;  %4031 = vmatmul.mubr.msk.f32.vlgmr.msra.gmra.mxu1 %vm533_vm2, %v2088_v44 }
 0x517   :  { %4033 = vmatprep.subr.mxu0 %v5178_v10  ;;  %4044 = vmatprep.subr.mxu1 %v5178_v10 }
 0x518   :  { %4034 = vmatpush3.msra.mxu0 %v4923_v25  ;;  %4045 = vmatpush3.msra.mxu1 %v4929_v26 }
 0x519   :  { %4035 = vmatprep.subr.mxu0 %v5178_v10  ;;  %4046 = vmatprep.subr.mxu1 %v5178_v10 }
 0x51a   :  { %4036 = vmatpush3.msra.mxu0 %v4937_v27  ;;  %4047 = vmatpush3.msra.mxu1 %v4943_v28 }
 0x51b   :  { %4037 = vmatprep.subr.mxu0 %v5178_v10  ;;  %4048 = vmatprep.subr.mxu1 %v5178_v10 }
 0x51c   :  { %4038 = vmatpush3.msra.mxu0 %v4951_v29  ;;  %4049 = vmatpush3.msra.mxu1 %v4957_v30 }
 0x51d   :  { %4039 = vmatprep.subr.mxu0 %v5178_v10  ;;  %4050 = vmatprep.subr.mxu1 %v5178_v10 }
 0x51e   :  { %4040 = vmatpush3.msra.mxu0 %v4965_v31  ;;  %4051 = vmatpush3.msra.mxu1 %v4971_v32 }
 0x51f   :  { %4041 = vmatprep.mubr.msk.f32.mxu0 %vm4337_vm1, %v5178_v10  ;;  %4052 = vmatprep.mubr.msk.f32.mxu1 %vm4337_vm1, %v5178_v10 }
 0x520   :  { %4055 = vmatprep.subr.mxu0 %v5178_v10  ;;  %4066 = vmatprep.subr.mxu1 %v5178_v10 }
 0x5cd   :  { %v2158_v39 = vpop.f32.mrf.mxu0  ;;  %v2229_v45 = vpop.f32.mrf.mxu1 }
 0x5ce   :  { %v2162_v11 = vadd.f32 %v2158_v39, %v4630_v56  ;;  %v2233_v33 = vadd.f32 %v2229_v45, %v4633_v57 }
 0x5cf   :  { %v3999_v36 = vpop.f32.mrf.mxu0  ;;  %v4010_v16 = vpop.f32.mrf.mxu1 }
 0x5d0   :  { %v3463_v48 = vmul.f32 -1.442695, %v2162_v11  ;;  %v3464_v49 = vmul.f32 -1.442695, %v2233_v33 }
 0x5d2   :  { %4231 = vpow2.f32 %v3463_v48 }
 0x5d3   :  { %4233 = vpow2.f32 %v3464_v49 }
 0x5d6   :  { %v2300_v34 = vpop.f32.mrf.mxu0  ;;  %v2371_v35 = vpop.f32.mrf.mxu1 }
 0x5d7   :  { %v2375_v42 = vadd.f32 %v2371_v35, %v4669_v58  ;;  %v2304_v37 = vadd.f32 %v2300_v34, %v4667_v55  ;;  %v5181_v35 = vld [vmem:[#allocation9_spill] sm:$0xff] }
 0x5d8   :  { %v4021_v52 = vpop.f32.mrf.mxu0  ;;  %v4032_v53 = vpop.f32.mrf.mxu1 }
 0x5d9   :  { %v3465_v43 = vmul.f32 -1.442695, %v2375_v42  ;;  %v5182_v52 = vld [vmem:[#allocation10_spill] sm:$0xff] }
 0x5db   :  { %4235 = vpow2.f32 %v3465_v43 }
 0x5dc   :  { %4237 = vtanh.f32 %v2304_v37 }
 0x5df   :  { %v4232_v5 = vpop.eup %4231 }
 0x5e0   :  { %v4234_v40 = vpop.eup %4233  ;;  %v2379_v56 = vadd.f32 1.0, %v4232_v5 }
 0x5e1   :  { %v2385_v57 = vadd.f32 1.0, %v4234_v40 }
 0x5e2   :  { %4239 = vrcp.f32 %v2379_v56 }
 0x5e3   :  { %4241 = vrcp.f32 %v2385_v57 }
 0x5e8   :  { %v4236_v15 = vpop.eup %4235 }
 0x5e9   :  { %v4238_v7 = vpop.eup %4237  ;;  %v2392_v20 = vadd.f32 1.0, %v4236_v15  ;;  %v5183_v15 = vld [vmem:[#allocation12_spill] sm:$0xff] }
 0x5eb   :  { %4243 = vrcp.f32 %v2392_v20  ;;  %v5184_v20 = vld [vmem:[#allocation11_spill] sm:$0xff] }
 0x5ef   :  { %v4240_v17 = vpop.eup %4239 }
 0x5f0   :  { %v4242_v18 = vpop.eup %4241  ;;  %v2396_v19 = vmul.f32 %v4240_v17, %v4238_v7 }
 0x5f1   :  { %v2395_v58 = vmul.f32 %v4242_v18, %v4893_v6 }
 0x5f3   :  { %v4985_v21 = vadd.f32 %v2396_v19, %v2395_v58 }
 0x5f5   :  { %4245 = vtanh.f32 %v4985_v21 }
 0x5f8   :  { %v4244_v55 = vpop.eup %4243 }
 0x602   :  { %v4246_v22 = vpop.eup %4245 }
 0x603   :  { %v2399_v23 = vmul.f32 %v4246_v22, %v4244_v55 }
 0x605   :  { %4042 = vmatmul.mubr.msk.f32.vlgmr.msra.gmra.mxu0 %vm533_vm2, %v2399_v23  ;;  %4053 = vmatmul.mubr.msk.f32.vlgmr.msra.gmra.mxu1 %vm533_vm2, %v2399_v23 }
 0x606   :  { %4056 = vmatpush3.msra.mxu0 %v4993_v24  ;;  %4067 = vmatpush3.msra.mxu1 %v4999_v3 }
 0x607   :  { %4057 = vmatprep.subr.mxu0 %v5178_v10  ;;  %4068 = vmatprep.subr.mxu1 %v5178_v10 }
 0x608   :  { %4058 = vmatpush3.msra.mxu0 %v5007_v4  ;;  %4069 = vmatpush3.msra.mxu1 %v5013_v50 }
 0x609   :  { %4059 = vmatprep.subr.mxu0 %v5178_v10  ;;  %4070 = vmatprep.subr.mxu1 %v5178_v10 }
 0x60a   :  { %4060 = vmatpush3.msra.mxu0 %v5021_v14  ;;  %4071 = vmatpush3.msra.mxu1 %v5027_v47 }
 0x60b   :  { %4061 = vmatprep.subr.mxu0 %v5178_v10  ;;  %4072 = vmatprep.subr.mxu1 %v5178_v10 }
 0x60c   :  { %4062 = vmatpush3.msra.mxu0 %v5035_v13  ;;  %4063 = vmatprep.mubr.msk.f32.mxu0 %vm4337_vm1, %v5178_v10 }
 0x60d   :  { %4073 = vmatpush3.msra.mxu1 %v5043_v12  ;;  %4074 = vmatprep.mubr.msk.f32.mxu1 %vm4337_vm1, %v5178_v10 }
 0x60e   :  { %4064 = vmatmul.mubr.msk.f32.vlgmr.msra.gmra.mxu0 %vm533_vm2, %v2399_v23  ;;  %4075 = vmatmul.mubr.msk.f32.vlgmr.msra.gmra.mxu1 %vm533_vm2, %v2399_v23 }
 0x60f   :  { %4077 = vmatprep.subr.mxu0 %v5178_v10  ;;  %4088 = vmatprep.subr.mxu1 %v5178_v10 }
 0x610   :  { %4078 = vmatpush3.msra.mxu0 %v4923_v25  ;;  %4089 = vmatpush3.msra.mxu1 %v4929_v26  ;;  %v5180_v25 = vld [vmem:[#allocation13_spill] sm:$0xff] }
 0x611   :  { %4079 = vmatprep.subr.mxu0 %v5178_v10  ;;  %4090 = vmatprep.subr.mxu1 %v5178_v10 }
 0x612   :  { %4080 = vmatpush3.msra.mxu0 %v4937_v27  ;;  %4091 = vmatpush3.msra.mxu1 %v4943_v28 }
 0x613   :  { %4081 = vmatprep.subr.mxu0 %v5178_v10  ;;  %4092 = vmatprep.subr.mxu1 %v5178_v10 }
 0x614   :  { %4082 = vmatpush3.msra.mxu0 %v4951_v29  ;;  %4093 = vmatpush3.msra.mxu1 %v4957_v30 }
 0x615   :  { %4083 = vmatprep.subr.mxu0 %v5178_v10  ;;  %4094 = vmatprep.subr.mxu1 %v5178_v10 }
 0x616   :  { %4084 = vmatpush3.msra.mxu0 %v4965_v31  ;;  %4095 = vmatpush3.msra.mxu1 %v4971_v32 }
 0x617   :  { %4085 = vmatprep.mubr.msk.f32.mxu0 %vm4337_vm1, %v5178_v10  ;;  %4096 = vmatprep.mubr.msk.f32.mxu1 %vm4337_vm1, %v5178_v10 }
 0x618   :  { %4099 = vmatprep.subr.mxu0 %v5178_v10  ;;  %4110 = vmatprep.subr.mxu1 %v5178_v10 }
 0x6c5   :  { %v2469_v2 = vpop.f32.mrf.mxu0  ;;  %v2540_v46 = vpop.f32.mrf.mxu1 }
 0x6c6   :  { %v2473_v62 = vadd.f32 %v2469_v2, %v4650_v8  ;;  %v2544_v63 = vadd.f32 %v2540_v46, %v4653_v9 }
 0x6c7   :  { %v4043_v51 = vpop.f32.mrf.mxu0  ;;  %v4054_v41 = vpop.f32.mrf.mxu1 }
 0x6c8   :  { %v3470_v54 = vmul.f32 -1.442695, %v2473_v62  ;;  %v3471_v59 = vmul.f32 -1.442695, %v2544_v63  ;;  %v62_v63 = vld [vmem:[%s5163_s2 + $0xe0] sm:$0xff]  ;;  %v61_v51 = vld [vmem:[%s5163_s2 + $0xd8] sm:$0xff] }
 0x6c9   :  { %v60_v41 = vld [vmem:[%s5163_s2 + $0xd0] sm:$0xff] }
 0x6ca   :  { %4247 = vpow2.f32 %v3470_v54  ;;  %v3022_v54 = vld [vmem:[%s5164_s3] sm:$0xff] }
 0x6cb   :  { %4249 = vpow2.f32 %v3471_v59  ;;  %v3024_v59 = vstv %s3023_s20 }
 0x6ce   :  { %v2611_v60 = vpop.f32.mrf.mxu0  ;;  %v2682_v1 = vpop.f32.mrf.mxu1 }
 0x6cf   :  { %v2686_v6 = vadd.f32 %v2682_v1, %v5179_v0  ;;  %v2615_v26 = vadd.f32 %v2611_v60, %v5180_v25  ;;  %v3480_v60 = vld [vmem:[%s5164_s3 + $0x8] sm:$0xff]  ;;  %v3030_v1 = vstv %s3481_s21  ;;  %v3025_v0 = vmul.f32 %v3024_v59, %v3022_v54 }
 0x6d0   :  { %v4065_v61 = vpop.f32.mrf.mxu0  ;;  %v4076_v38 = vpop.f32.mrf.mxu1 }
 0x6d1   :  { %v3472_v44 = vmul.f32 -1.442695, %v2686_v6  ;;  %v3031_v6 = vmul.f32 %v3480_v60, %v3030_v1  ;;  %v3482_v61 = vld [vmem:[%s5164_s3 + $0x10] sm:$0xff]  ;;  %v3036_v38 = vstv %s3483_s22 }
 0x6d2   :  { %v3037_v25 = vmul.f32 %v3482_v61, %v3036_v38 }
 0x6d3   :  { %4251 = vpow2.f32 %v3472_v44  ;;  %v3032_v44 = vadd.f32 %v3031_v6, %v3025_v0 }
 0x6d4   :  { %4253 = vtanh.f32 %v2615_v26  ;;  %v3484_v26 = vld [vmem:[%s5164_s3 + $0x18] sm:$0xff] }
 0x6d7   :  { %v4248_v27 = vpop.eup %4247 }
 0x6d8   :  { %v4250_v28 = vpop.eup %4249  ;;  %v2690_v8 = vadd.f32 1.0, %v4248_v27  ;;  %v3042_v27 = vstv %s3485_s0 }
 0x6d9   :  { %v2696_v9 = vadd.f32 1.0, %v4250_v28  ;;  %v3038_v28 = vadd.f32 %v3037_v25, %v3032_v44 }
 0x6da   :  { %4255 = vrcp.f32 %v2690_v8  ;;  %v3043_v8 = vmul.f32 %v3484_v26, %v3042_v27 }
 0x6db   :  { %4257 = vrcp.f32 %v2696_v9 }
 0x6dc   :  { %v3044_v9 = vadd.f32 %v3043_v8, %v3038_v28 }
 0x6e0   :  { %v4252_v29 = vpop.eup %4251 }
 0x6e1   :  { %v4254_v30 = vpop.eup %4253  ;;  %v2703_v45 = vadd.f32 1.0, %v4252_v29  ;;  %v3046_v29 = vstv %s3486_s1 }
 0x6e3   :  { %4259 = vrcp.f32 %v2703_v45  ;;  %v3125_v45 = vld [vmem:[%s5165_s4] sm:$0xff] }
 0x6e7   :  { %v4256_v31 = vpop.eup %4255 }
 0x6e8   :  { %v4258_v32 = vpop.eup %4257  ;;  %v2707_v39 = vmul.f32 %v4256_v31, %v4254_v30  ;;  %v3047_v30 = vadd.f32 %v3046_v29, %v3044_v9 }
 0x6e9   :  { %v2706_v11 = vmul.f32 %v4258_v32, %v4985_v21 }
 0x6ea   :  { %v3049_v31 = vmul.f32 0.01, %v3047_v30  ;;  %vm3048_vm3 = vcmp.ge.f32.partialorder %v3047_v30, 0.0 }
 0x6eb   :  { %v2708_v33 = vadd.f32 %v2707_v39, %v2706_v11 }
 0x6ec   :  { %v3050_v32 = vsel %vm3048_vm3, %v3047_v30, %v3049_v31 }
 0x6ed   :  { %4261 = vtanh.f32 %v2708_v33 }
 0x6f0   :  { %v4260_v36 = vpop.eup %4259 }
 0x6fa   :  { %v4262_v16 = vpop.eup %4261 }
 0x6fb   :  { %v2710_v48 = vmul.f32 %v4262_v16, %v4260_v36 }
 0x6fd   :  { %4086 = vmatmul.mubr.msk.f32.vlgmr.msra.gmra.mxu0 %vm533_vm2, %v2710_v48  ;;  %4097 = vmatmul.mubr.msk.f32.vlgmr.msra.gmra.mxu1 %vm533_vm2, %v2710_v48 }
 0x6fe   :  { %4100 = vmatpush3.msra.mxu0 %v4993_v24  ;;  %4111 = vmatpush3.msra.mxu1 %v4999_v3 }
 0x6ff   :  { %4101 = vmatprep.subr.mxu0 %v5178_v10  ;;  %4112 = vmatprep.subr.mxu1 %v5178_v10 }
 0x700   :  { %4102 = vmatpush3.msra.mxu0 %v5007_v4  ;;  %4113 = vmatpush3.msra.mxu1 %v5013_v50 }
 0x701   :  { %4103 = vmatprep.subr.mxu0 %v5178_v10  ;;  %4114 = vmatprep.subr.mxu1 %v5178_v10 }
 0x702   :  { %4104 = vmatpush3.msra.mxu0 %v5021_v14  ;;  %4115 = vmatpush3.msra.mxu1 %v5027_v47 }
 0x703   :  { %4105 = vmatprep.subr.mxu0 %v5178_v10  ;;  %4116 = vmatprep.subr.mxu1 %v5178_v10 }
 0x704   :  { %4106 = vmatpush3.msra.mxu0 %v5035_v13  ;;  %4107 = vmatprep.mubr.msk.f32.mxu0 %vm4337_vm1, %v5178_v10 }
 0x705   :  { %4117 = vmatpush3.msra.mxu1 %v5043_v12  ;;  %4118 = vmatprep.mubr.msk.f32.mxu1 %vm4337_vm1, %v5178_v10 }
 0x706   :  { %4108 = vmatmul.mubr.msk.f32.vlgmr.msra.gmra.mxu0 %vm533_vm2, %v2710_v48  ;;  %4119 = vmatmul.mubr.msk.f32.vlgmr.msra.gmra.mxu1 %vm533_vm2, %v2710_v48 }
 0x707   :  { %4121 = vmatprep.subr.mxu0 %v5178_v10  ;;  %4126 = vmatprep.subr.mxu1 %v5178_v10 }
 0x708   :  { %4123 = vmatprep.mubr.msk.f32.mxu0 %vm4337_vm1, %v5178_v10  ;;  %4128 = vmatprep.mubr.msk.f32.mxu1 %vm4337_vm1, %v5178_v10 }
 0x7bd   :  { %v2780_v49 = vpop.f32.mrf.mxu0  ;;  %v2851_v34 = vpop.f32.mrf.mxu1 }
 0x7be   :  { %v2784_v42 = vadd.f32 %v2780_v49, %v5181_v35  ;;  %v2855_v53 = vadd.f32 %v2851_v34, %v5182_v52 }
 0x7bf   :  { %v4087_v43 = vpop.f32.mrf.mxu0  ;;  %v4098_v37 = vpop.f32.mrf.mxu1 }
 0x7c0   :  { %v3477_v5 = vmul.f32 -1.442695, %v2784_v42  ;;  %v3478_v40 = vmul.f32 -1.442695, %v2855_v53 }
 0x7c2   :  { %4263 = vpow2.f32 %v3477_v5 }
 0x7c3   :  { %4265 = vpow2.f32 %v3478_v40 }
 0x7c6   :  { %v2922_v56 = vpop.f32.mrf.mxu0  ;;  %v2993_v57 = vpop.f32.mrf.mxu1 }
 0x7c7   :  { %v2997_v7 = vadd.f32 %v2993_v57, %v5183_v15  ;;  %v2926_v58 = vadd.f32 %v2922_v56, %v5184_v20  ;;  %v59_v20 = vld [vmem:[%s5163_s2 + $0xc8] sm:$0xff] }
 0x7c8   :  { %v4109_v17 = vpop.f32.mrf.mxu0  ;;  %v4120_v18 = vpop.f32.mrf.mxu1 }
 0x7c9   :  { %v3479_v19 = vmul.f32 -1.442695, %v2997_v7 }
 0x7cb   :  { %4267 = vpow2.f32 %v3479_v19 }
 0x7cc   :  { %4269 = vtanh.f32 %v2926_v58 }
 0x7cf   :  { %v4264_v21 = vpop.eup %4263 }
 0x7d0   :  { %v4266_v55 = vpop.eup %4265  ;;  %v3001_v22 = vadd.f32 1.0, %v4264_v21 }
 0x7d1   :  { %v3007_v23 = vadd.f32 1.0, %v4266_v55  ;;  %v63_v55 = vld [vmem:[%s5163_s2 + $0xe8] sm:$0xff]  ;;  %s4311_s2 = scalar_lea.vmem %s3388_s12, 16 }
 0x7d2   :  { %4271 = vrcp.f32 %v3001_v22  ;;  %v5185_v22 = vld [vmem:[#allocation8_spill] sm:$0xff]  ;;  %p4312_p5 = scmp.ne.s32.totalorder %s3388_s12, %s4311_s2  ;;  %p4317_p7 = scmp.lt.s32.totalorder %s4315_s13, %s4311_s2 }
 0x7d3   :  { %4273 = vrcp.f32 %v3007_v23  ;;  %v5186_v23 = vsub.s32 0, %v5185_v22 }
 0x7d4   :  { %p4318_p8 = por %p4317_p7, %p4316_p6 }
 0x7d6   :  { %p4319_p9 = pnand %p4318_p8, %p4312_p5 }
 0x7d8   :  { %v4268_v24 = vpop.eup %4267 }
 0x7d9   :  { %v4270_v3 = vpop.eup %4269  ;;  %v3014_v47 = vadd.f32 1.0, %v4268_v24  ;;  %v3223_v24 = vrot.slane %v63_v55, %v5186_v23 }
 0x7db   :  { %4275 = vrcp.f32 %v3014_v47  ;;  %v3303_v47 = vrot.slane %v63_v55, 3 }
 0x7df   :  { %v4272_v4 = vpop.eup %4271 }
 0x7e0   :  { %v4274_v50 = vpop.eup %4273  ;;  %v3018_v14 = vmul.f32 %v4272_v4, %v4270_v3 }
 0x7e1   :  { %v3017_v13 = vmul.f32 %v4274_v50, %v2708_v33 }
 0x7e3   :  { %v3019_v12 = vadd.f32 %v3018_v14, %v3017_v13  ;;  %v3301_v13 = vstv %s3491_s10 }
 0x7e5   :  { %4277 = vtanh.f32 %v3019_v12 }
 0x7e8   :  { %v4276_v2 = vpop.eup %4275 }
 0x7f2   :  { %v4278_v46 = vpop.eup %4277 }
 0x7f3   :  { %v3021_v62 = vmul.f32 %v4278_v46, %v4276_v2 }
 0x7f5   :  { %4122 = vmatpush3.xpose.msk.msra.mxu0 %vm533_vm2, %v3021_v62  ;;  %4127 = vmatpush3.msra.mxu1 %v3021_v62 }
 0x7f6   :  { %4131 = vmatprep.subr.mxu0 %v5178_v10  ;;  %4142 = vmatprep.subr.mxu1 %v5178_v10 }
 0x7f8   :  { %4124 = vmatmul.mubr.msk.f32.vlgmr.msra.gmra.mxu0 %vm533_vm2, %v3021_v62 }
 0x7f9   :  { %4139 = vmatprep.mubr.msk.f32.mxu0 %vm4337_vm1, %v5178_v10  ;;  %4132 = vmatpush3.msra.mxu0 %v62_v63 }
 0x7fa   :  { %4133 = vmatprep.subr.mxu0 %v5178_v10 }
 0x7fb   :  { %4134 = vmatpush3.msra.mxu0 %v61_v51 }
 0x7fc   :  { %4135 = vmatprep.subr.mxu0 %v5178_v10 }
 0x7fd   :  { %4136 = vmatpush3.msra.mxu0 %v60_v41 }
 0x7fe   :  { %4137 = vmatprep.subr.mxu0 %v5178_v10 }
 0x7ff   :  { %4138 = vmatpush3.msra.mxu0 %v59_v20 }
 0x8b8   :  { %v3120_v39 = vpop.f32.mrf.mxu0 }
 0x8b9   :  { %v3124_v11 = vmul.f32 %v3120_v39, %v3050_v32 }
 0x8ba   :  { %v4125_v33 = vpop.f32.mrf.mxu0 }
 0x8bb   :  { %v3126_v36 = vadd.f32 %v3125_v45, %v3124_v11 }
 0x8bd   :  { %v3128_v16 = vsel %vm3127_vm4, %v3126_v36, -inf }
 0x8be   :  { %v3129_v48 = vrot.slane %v3128_v16, 4 }
 0x8c0   :  { %v3130_v49 = vmax.f32 %v3128_v16, %v3129_v48 }
 0x8c2   :  { %v3131_v34 = vrot.slane %v3130_v49, 2 }
 0x8c4   :  { %v3132_v35 = vmax.f32 %v3130_v49, %v3131_v34 }
 0x8c6   :  { %v3133_v42 = vrot.slane %v3132_v35, 1 }
 0x8c8   :  { %v3134_v52 = vmax.f32 %v3132_v35, %v3133_v42 }
 0x8ca   :  { %v3135_v53 = vsub.f32 %v3126_v36, %v3134_v52 }
 0x8cc   :  { %v3136_v43 = vmul.f32 1.442695, %v3135_v53 }
 0x8ce   :  { %4279 = vpow2.f32 %v3136_v43 }
 0x8db   :  { %v4280_v37 = vpop.eup %4279 }
 0x8dc   :  { %v3138_v5 = vsel %vm3127_vm4, %v4280_v37, 0.0 }
 0x8dd   :  { %v3139_v40 = vrot.slane %v3138_v5, 4 }
 0x8df   :  { %v3140_v56 = vadd.f32 %v3139_v40, %v3138_v5 }
 0x8e1   :  { %v3141_v57 = vrot.slane %v3140_v56, 2 }
 0x8e3   :  { %v3142_v15 = vadd.f32 %v3141_v57, %v3140_v56 }
 0x8e5   :  { %v3143_v7 = vrot.slane %v3142_v15, 1 }
 0x8e7   :  { %v3144_v17 = vadd.f32 %v3143_v7, %v3142_v15 }
 0x8e9   :  { %4281 = vrcp.f32 %v3144_v17 }
 0x8f6   :  { %v4282_v18 = vpop.eup %4281 }
 0x8f7   :  { %v3146_v19 = vmul.f32 %v4282_v18, %v4280_v37 }
 0x8f9   :  { %4129 = vmatmul.mubr.msk.f32.vlgmr.msra.gmra.mxu1 %vm3127_vm4, %v3146_v19 }
 0x8fa   :  { %4144 = vmatprep.mubr.msk.f32.mxu1 %vm4337_vm1, %v5178_v10 }
 0x9b9   :  { %v3216_v58 = vpop.f32.mrf.mxu1 }
 0x9ba   :  { %4140 = vmatmul.mubr.msk.f32.vlgmr.msra.gmra.mxu0 %vm533_vm2, %v3216_v58 }
 0x9bb   :  { %v4130_v21 = vpop.f32.mrf.mxu1 }
 0xa7a   :  { %v3293_v3 = vpop.f32.mrf.mxu0 }
 0xa7b   :  { %v3294_v4 = vadd.f32 %v3293_v3, %v3223_v24 }
 0xa7c   :  { %v4141_v50 = vpop.f32.mrf.mxu0 }
 0xa7d   :  { %vm3297_vm5 = vcmp.ge.f32.partialorder %v3294_v4, 0.0  ;;  %v3298_v10 = vmul.f32 0.01, %v3294_v4 }
 0xa7f   :  { %v3299_v14 = vsel %vm3297_vm5, %v3294_v4, %v3298_v10 }
 0xa80   :  { %4143 = vmatpush3.xpose.msk.msra.mxu1 %vm533_vm2, %v3299_v14 }
 0xa83   :  { %4145 = vmatmul.mubr.msk.f32.vlgmr.msra.gmra.mxu1 %vm533_vm2, %v3303_v47 }
 0xb43   :  { %v3375_v12 = vpop.f32.mrf.mxu1 }
 0xb44   :  { %v3376_v2 = vadd.f32 %v3375_v12, %v3301_v13 }
 0xb45   :  { %v4146_v46 = vpop.f32.mrf.mxu1 }
 0xb46   :  { %3380 = vst.msk [vmem:[#allocation5] sm:$0x1] %vm3379_vm6, %v3376_v2 }
 0xb47   :  { %4322 = shalt.err (!%p4319_p9)
}
 0xb48   :  { %3390 = dma.vmem_to_hbm [thread:$0]  %s3388_s12, 16, %s5166_s5, [#allocation3]  }
 0xb49   :  { %4333 = dma.done.wait [#allocation3], 16  }
 0xb4a   :  { %4334 = vsyncadd [#allocation3], 4294967280 }
 0xb4b   :  { %3394 = vsyncpa [#allocation3], 1 }
 0xb4c   :  { %3395 = vsyncpa [#allocation4], 1 }

</bundles_post_ra>
